<compile_context>
chip_gen: v6e
topology: v6e:2x2x1
jax: 0.10.0
libtpu: 0.0.40
codegen_flags: <defaults>
</compile_context>

<pallas_src>
import functools

import jax
import jax.numpy as jnp
from jax import lax
from jax.experimental import pallas as pl
from jax.experimental.pallas import tpu as pltpu


def _gru_fc_kernel(gi_ref, h0_ref, whh_ref, bhn_ref, wfc_ref, bfc_ref,
                   outs_ref, hT_ref, *, seq_len, hidden_dim, unroll):
    """Single invocation: fori_loop over timesteps, hidden carried in vregs.

    gi_ref : (T, Bp, 3H)  x_t @ W_ih^T + b_ih + [b_hr|b_hz|0], gate order [r|z|n]
    h0_ref : (Bp, H)      initial hidden state
    whh_ref: (H, 3H)      recurrent weights (transposed; bf16 or f32)
    bhn_ref: (1, H)       b_hn (stays inside r*(.), per PyTorch GRU)
    wfc_ref: (H, Vp)      FC weights (transposed, lane-padded; bf16 or f32)
    bfc_ref: (1, Vp)
    outs_ref: (Bp, Vp)    logits (padded)
    hT_ref  : (Bp, H)     final hidden state
    """
    H = hidden_dim
    whh = whh_ref[...]                               # resident for the whole loop
    mxu_dtype = whh.dtype
    # Hoist the bias broadcast out of the loop (JAX does not CSE broadcast_in_dim).
    bhn = jnp.broadcast_to(bhn_ref[...], hT_ref.shape)        # (Bp, H)

    def step(t, h_prev):
        gi = gi_ref[t]                                         # (Bp, 3H)
        gh = jnp.dot(h_prev.astype(mxu_dtype), whh,
                     preferred_element_type=jnp.float32)       # (Bp, 3H)
        i_r, i_z, i_n = gi[:, 0:H], gi[:, H:2 * H], gi[:, 2 * H:3 * H]
        h_r, h_z, h_n = gh[:, 0:H], gh[:, H:2 * H], gh[:, 2 * H:3 * H]
        r = jax.nn.sigmoid(i_r + h_r)
        z = jax.nn.sigmoid(i_z + h_z)
        n = jnp.tanh(i_n + r * (h_n + bhn))
        return (1.0 - z) * n + z * h_prev                      # (Bp, H) f32

    h_T = lax.fori_loop(0, seq_len, step, h0_ref[...], unroll=unroll)

    hT_ref[...] = h_T
    outs_ref[...] = (
        jnp.dot(h_T.astype(wfc_ref.dtype), wfc_ref[...],
                preferred_element_type=jnp.float32)
        + bfc_ref[...]
    )


def rnn_generalization_forward(x_tokens, params, hidden=None, *, use_bf16_mxu=True):
    """x_tokens: (B, T) int32 token ids.  Returns (outs (B, V), hidden (1, B, H))."""
    emb_table = params["embedding"]                  # (V, E)
    w_ih = params["w_ih"]                            # (3H, E)  [r|z|n]
    w_hh = params["w_hh"]                            # (3H, H)
    b_ih = params["b_ih"]                            # (3H,)
    b_hh = params["b_hh"]                            # (3H,)
    w_fc = params["w_fc"]                            # (V, H)
    b_fc = params["b_fc"]                            # (V,)

    B, T = x_tokens.shape
    V, E = emb_table.shape
    H = w_hh.shape[1]
    H3 = 3 * H

    mxu_dtype = jnp.bfloat16 if use_bf16_mxu else jnp.float32

    wfc_t = jnp.transpose(w_fc).astype(jnp.float32)  # (H, V)
    bfc_f = b_fc.astype(jnp.float32)

    if hidden is None:
        h0 = jnp.zeros((B, H), jnp.float32)
    else:
        h0 = jnp.asarray(hidden, jnp.float32).reshape(B, H)

    if T == 0:                                       # degenerate: GRU returns h0
        outs = h0 @ wfc_t + bfc_f
        return outs, h0.reshape(1, B, H)

    # ---- glue in plain JAX (gather + hoisted input projection) --------------
    # Fold b_ih and the r/z thirds of b_hh into gi; b_hn stays in the kernel.
    b_comb = (b_ih.astype(jnp.float32)
              + jnp.concatenate([b_hh[:2 * H].astype(jnp.float32),
                                 jnp.zeros((H,), jnp.float32)]))
    w_ih_t = jnp.transpose(w_ih).astype(jnp.float32)                      # (E, 3H)

    if B * T > V:
        # Fuse embedding + input projection: gather rows of a (V, 3H) table.
        proj_table = emb_table.astype(jnp.float32) @ w_ih_t + b_comb      # (V, 3H)
        gi = jnp.take(proj_table, x_tokens, axis=0)                       # (B, T, 3H)
    else:
        embedded = jnp.take(emb_table, x_tokens, axis=0).astype(jnp.float32)
        gi = (embedded.reshape(B * T, E) @ w_ih_t + b_comb).reshape(B, T, H3)
    gi_tb = jnp.transpose(gi, (1, 0, 2))                                  # (T, B, 3H)

    # Sublane-pad the batch so per-step loads / h carry / output stores are
    # full (8, 128) vregs (unmasked vld/vst).
    Bp = max(8, ((B + 7) // 8) * 8)
    if Bp != B:
        gi_tb = jnp.pad(gi_tb, ((0, 0), (0, Bp - B), (0, 0)))
        h0p = jnp.pad(h0, ((0, Bp - B), (0, 0)))
    else:
        h0p = h0

    whh_t = jnp.transpose(w_hh).astype(mxu_dtype)                         # (H, 3H)
    bhn = b_hh[2 * H:].reshape(1, H).astype(jnp.float32)                  # (1, H)

    # Lane-dense FC output: pad V up to a multiple of 128, slice afterwards.
    Vp = max(128, ((V + 127) // 128) * 128)
    wfc_p = jnp.pad(wfc_t, ((0, 0), (0, Vp - V))).astype(mxu_dtype)       # (H, Vp)
    bfc_p = jnp.pad(bfc_f, (0, Vp - V)).reshape(1, Vp)                    # (1, Vp)

    # Size scoped VMEM to the actual footprint (v5e default is only 16 MiB;
    # over-reserving starves the surrounding XLA fusion; v7x only has 64 MiB).
    def _nbytes(*arrs):
        return sum(int(a.size) * a.dtype.itemsize for a in arrs)
    footprint = (_nbytes(gi_tb, h0p, whh_t, bhn, wfc_p, bfc_p)
                 + Bp * Vp * 4 + Bp * H * 4)
    vmem_limit = int(min(max(2 * footprint + (1 << 20), 8 << 20), 48 << 20))

    kernel = functools.partial(_gru_fc_kernel, seq_len=T, hidden_dim=H,
                               unroll=min(T, 8))
    vmem_spec = pl.BlockSpec(memory_space=pltpu.MemorySpace.VMEM)

    outs_p, h_Tp = pl.pallas_call(
        kernel,
        out_shape=(
            jax.ShapeDtypeStruct((Bp, Vp), jnp.float32),
            jax.ShapeDtypeStruct((Bp, H), jnp.float32),
        ),
        in_specs=[vmem_spec] * 6,
        out_specs=(vmem_spec, vmem_spec),
        compiler_params=pltpu.CompilerParams(vmem_limit_bytes=vmem_limit),
    )(gi_tb, h0p, whh_t, bhn, wfc_p, bfc_p)

    return outs_p[:B, :V], h_Tp[:B].reshape(1, B, H)


def _reference_forward(x_tokens, params):
    """Pure-JAX f32 reference of the same forward pass (correctness check)."""
    emb = jnp.take(params["embedding"], x_tokens, axis=0)      # (B, T, E)
    B = x_tokens.shape[0]
    H = params["w_hh"].shape[1]
    w_ih, w_hh = params["w_ih"], params["w_hh"]
    b_ih, b_hh = params["b_ih"], params["b_hh"]

    def step(h, x_t):
        gi = x_t @ w_ih.T + b_ih
        gh = h @ w_hh.T + b_hh
        i_r, i_z, i_n = gi[:, :H], gi[:, H:2 * H], gi[:, 2 * H:]
        h_r, h_z, h_n = gh[:, :H], gh[:, H:2 * H], gh[:, 2 * H:]
        r = jax.nn.sigmoid(i_r + h_r)
        z = jax.nn.sigmoid(i_z + h_z)
        n = jnp.tanh(i_n + r * h_n)
        h_new = (1.0 - z) * n + z * h
        return h_new, None

    h0 = jnp.zeros((B, H), jnp.float32)
    h_T, _ = lax.scan(step, h0, jnp.transpose(emb, (1, 0, 2)))
    outs = h_T @ params["w_fc"].T + params["b_fc"]
    return outs, h_T.reshape(1, B, H)


def _make_params(key, vocab_size, embedding_dim, hidden_dim):
    ks = jax.random.split(key, 7)
    s = 0.05
    return {
        "embedding": jax.random.normal(ks[0], (vocab_size, embedding_dim), jnp.float32),
        "w_ih": s * jax.random.normal(ks[1], (3 * hidden_dim, embedding_dim), jnp.float32),
        "w_hh": s * jax.random.normal(ks[2], (3 * hidden_dim, hidden_dim), jnp.float32),
        "b_ih": s * jax.random.normal(ks[3], (3 * hidden_dim,), jnp.float32),
        "b_hh": s * jax.random.normal(ks[4], (3 * hidden_dim,), jnp.float32),
        "w_fc": s * jax.random.normal(ks[5], (vocab_size, hidden_dim), jnp.float32),
        "b_fc": s * jax.random.normal(ks[6], (vocab_size,), jnp.float32),
    }


if __name__ == "__main__":
    # Small shapes consistent with the module's forward pass.
    B, T = 2, 8            # batch, sequence length
    VOCAB = 64             # synthetic vocab size (len(vocab_w_i))
    E, H = 300, 128        # embedding_dim / hidden_dim from __init__

    key = jax.random.PRNGKey(0)
    k_param, k_tok = jax.random.split(key)
    params = _make_params(k_param, VOCAB, E, H)
    x = jax.random.randint(k_tok, (B, T), 0, VOCAB, dtype=jnp.int32)

    ref_outs, ref_hidden = _reference_forward(x, params)

    # f32 MXU path: tight numeric check of kernel structure / gate semantics.
    outs32, hid32 = rnn_generalization_forward(x, params, use_bf16_mxu=False)
    jax.block_until_ready((outs32, hid32))
    assert outs32.shape == (B, VOCAB) and hid32.shape == (1, B, H)
    assert jnp.allclose(outs32, ref_outs, atol=1e-4, rtol=1e-4)
    assert jnp.allclose(hid32, ref_hidden, atol=1e-4, rtol=1e-4)

    # Default bf16 MXU path (perf): looser tolerance for bf16 operand rounding.
    outs, hidden_out = rnn_generalization_forward(x, params)
    jax.block_until_ready((outs, hidden_out))
    assert outs.shape == (B, VOCAB) and hidden_out.shape == (1, B, H)
    assert jnp.allclose(outs, ref_outs, atol=2e-2, rtol=2e-2)
    assert jnp.allclose(hidden_out, ref_hidden, atol=2e-2, rtol=2e-2)

    print("KERNEL_OK")
</pallas_src>

<mosaic_0001>
module attributes {stable_mosaic.version = 11 : i64} {
  func.func @_gru_fc_kernel(%arg0: memref<8x8x384xf32, #tpu.memory_space<vmem>>, %arg1: memref<8x128xf32, #tpu.memory_space<vmem>>, %arg2: memref<128x384xf32, #tpu.memory_space<vmem>>, %arg3: memref<1x128xf32, #tpu.memory_space<vmem>>, %arg4: memref<128x128xf32, #tpu.memory_space<vmem>>, %arg5: memref<1x128xf32, #tpu.memory_space<vmem>>, %arg6: memref<8x128xf32, #tpu.memory_space<vmem>>, %arg7: memref<8x128xf32, #tpu.memory_space<vmem>>) attributes {dimension_semantics = [], scalar_prefetch = 0 : i64, scratch_operands = 0 : i64, tpu.core_type = #tpu.core_type<tc>} {
    %c0 = arith.constant 0 : index
    %c0_0 = arith.constant 0 : index
    %0 = vector.load %arg2[%c0, %c0_0] : memref<128x384xf32, #tpu.memory_space<vmem>>, vector<128x384xf32>
    %c0_1 = arith.constant 0 : index
    %c0_2 = arith.constant 0 : index
    %1 = vector.load %arg3[%c0_1, %c0_2] : memref<1x128xf32, #tpu.memory_space<vmem>>, vector<1x128xf32>
    %2 = vector.shape_cast %1 : vector<1x128xf32> to vector<1x128xf32>
    %3 = vector.broadcast %2 : vector<1x128xf32> to vector<8x128xf32>
    %c0_3 = arith.constant 0 : index
    %c0_4 = arith.constant 0 : index
    %4 = vector.load %arg1[%c0_3, %c0_4] : memref<8x128xf32, #tpu.memory_space<vmem>>, vector<8x128xf32>
    %c0_i32 = arith.constant 0 : i32
    %5 = arith.index_cast %c0_i32 : i32 to index
    %c0_5 = arith.constant 0 : index
    %c0_6 = arith.constant 0 : index
    %6 = vector.load %arg0[%5, %c0_5, %c0_6] : memref<8x8x384xf32, #tpu.memory_space<vmem>>, vector<1x8x384xf32>
    %7 = vector.shape_cast %6 : vector<1x8x384xf32> to vector<8x384xf32>
    %cst = arith.constant dense<0.000000e+00> : vector<8x384xf32>
    %8 = tpu.matmul %4, %0, %cst {dimension_numbers = #tpu.dot_dimension_numbers<[1], [0], [0], [1], [0, 0, 1, 1], [], []>} : vector<8x128xf32>, vector<128x384xf32>, vector<8x384xf32> -> vector<8x384xf32>
    %9 = vector.extract_strided_slice %7 {offsets = [0, 0], sizes = [8, 128], strides = [1, 1]} : vector<8x384xf32> to vector<8x128xf32>
    %10 = vector.extract_strided_slice %7 {offsets = [0, 128], sizes = [8, 128], strides = [1, 1]} : vector<8x384xf32> to vector<8x128xf32>
    %11 = vector.extract_strided_slice %7 {offsets = [0, 256], sizes = [8, 128], strides = [1, 1]} : vector<8x384xf32> to vector<8x128xf32>
    %12 = vector.extract_strided_slice %8 {offsets = [0, 0], sizes = [8, 128], strides = [1, 1]} : vector<8x384xf32> to vector<8x128xf32>
    %13 = vector.extract_strided_slice %8 {offsets = [0, 128], sizes = [8, 128], strides = [1, 1]} : vector<8x384xf32> to vector<8x128xf32>
    %14 = vector.extract_strided_slice %8 {offsets = [0, 256], sizes = [8, 128], strides = [1, 1]} : vector<8x384xf32> to vector<8x128xf32>
    %15 = arith.addf %9, %12 : vector<8x128xf32>
    %16 = arith.negf %15 : vector<8x128xf32>
    %17 = math.exp %16 : vector<8x128xf32>
    %cst_7 = arith.constant 1.000000e+00 : f32
    %18 = vector.broadcast %cst_7 : f32 to vector<8x128xf32>
    %19 = arith.addf %18, %17 : vector<8x128xf32>
    %20 = arith.divf %18, %19 : vector<8x128xf32>
    %21 = arith.addf %10, %13 : vector<8x128xf32>
    %22 = arith.negf %21 : vector<8x128xf32>
    %23 = math.exp %22 : vector<8x128xf32>
    %cst_8 = arith.constant 1.000000e+00 : f32
    %24 = vector.broadcast %cst_8 : f32 to vector<8x128xf32>
    %25 = arith.addf %24, %23 : vector<8x128xf32>
    %26 = arith.divf %24, %25 : vector<8x128xf32>
    %27 = arith.addf %14, %3 : vector<8x128xf32>
    %28 = arith.mulf %20, %27 : vector<8x128xf32>
    %29 = arith.addf %11, %28 : vector<8x128xf32>
    %30 = math.tanh %29 : vector<8x128xf32>
    %cst_9 = arith.constant 1.000000e+00 : f32
    %31 = vector.broadcast %cst_9 : f32 to vector<8x128xf32>
    %32 = arith.subf %31, %26 : vector<8x128xf32>
    %33 = arith.mulf %32, %30 : vector<8x128xf32>
    %34 = arith.mulf %26, %4 : vector<8x128xf32>
    %35 = arith.addf %33, %34 : vector<8x128xf32>
    %c1_i32 = arith.constant 1 : i32
    %36 = arith.index_cast %c1_i32 : i32 to index
    %c0_10 = arith.constant 0 : index
    %c0_11 = arith.constant 0 : index
    %37 = vector.load %arg0[%36, %c0_10, %c0_11] : memref<8x8x384xf32, #tpu.memory_space<vmem>>, vector<1x8x384xf32>
    %38 = vector.shape_cast %37 : vector<1x8x384xf32> to vector<8x384xf32>
    %cst_12 = arith.constant dense<0.000000e+00> : vector<8x384xf32>
    %39 = tpu.matmul %35, %0, %cst_12 {dimension_numbers = #tpu.dot_dimension_numbers<[1], [0], [0], [1], [0, 0, 1, 1], [], []>} : vector<8x128xf32>, vector<128x384xf32>, vector<8x384xf32> -> vector<8x384xf32>
    %40 = vector.extract_strided_slice %38 {offsets = [0, 0], sizes = [8, 128], strides = [1, 1]} : vector<8x384xf32> to vector<8x128xf32>
    %41 = vector.extract_strided_slice %38 {offsets = [0, 128], sizes = [8, 128], strides = [1, 1]} : vector<8x384xf32> to vector<8x128xf32>
    %42 = vector.extract_strided_slice %38 {offsets = [0, 256], sizes = [8, 128], strides = [1, 1]} : vector<8x384xf32> to vector<8x128xf32>
    %43 = vector.extract_strided_slice %39 {offsets = [0, 0], sizes = [8, 128], strides = [1, 1]} : vector<8x384xf32> to vector<8x128xf32>
    %44 = vector.extract_strided_slice %39 {offsets = [0, 128], sizes = [8, 128], strides = [1, 1]} : vector<8x384xf32> to vector<8x128xf32>
    %45 = vector.extract_strided_slice %39 {offsets = [0, 256], sizes = [8, 128], strides = [1, 1]} : vector<8x384xf32> to vector<8x128xf32>
    %46 = arith.addf %40, %43 : vector<8x128xf32>
    %47 = arith.negf %46 : vector<8x128xf32>
    %48 = math.exp %47 : vector<8x128xf32>
    %cst_13 = arith.constant 1.000000e+00 : f32
    %49 = vector.broadcast %cst_13 : f32 to vector<8x128xf32>
    %50 = arith.addf %49, %48 : vector<8x128xf32>
    %51 = arith.divf %49, %50 : vector<8x128xf32>
    %52 = arith.addf %41, %44 : vector<8x128xf32>
    %53 = arith.negf %52 : vector<8x128xf32>
    %54 = math.exp %53 : vector<8x128xf32>
    %cst_14 = arith.constant 1.000000e+00 : f32
    %55 = vector.broadcast %cst_14 : f32 to vector<8x128xf32>
    %56 = arith.addf %55, %54 : vector<8x128xf32>
    %57 = arith.divf %55, %56 : vector<8x128xf32>
    %58 = arith.addf %45, %3 : vector<8x128xf32>
    %59 = arith.mulf %51, %58 : vector<8x128xf32>
    %60 = arith.addf %42, %59 : vector<8x128xf32>
    %61 = math.tanh %60 : vector<8x128xf32>
    %cst_15 = arith.constant 1.000000e+00 : f32
    %62 = vector.broadcast %cst_15 : f32 to vector<8x128xf32>
    %63 = arith.subf %62, %57 : vector<8x128xf32>
    %64 = arith.mulf %63, %61 : vector<8x128xf32>
    %65 = arith.mulf %57, %35 : vector<8x128xf32>
    %66 = arith.addf %64, %65 : vector<8x128xf32>
    %c2_i32 = arith.constant 2 : i32
    %67 = arith.index_cast %c2_i32 : i32 to index
    %c0_16 = arith.constant 0 : index
    %c0_17 = arith.constant 0 : index
    %68 = vector.load %arg0[%67, %c0_16, %c0_17] : memref<8x8x384xf32, #tpu.memory_space<vmem>>, vector<1x8x384xf32>
    %69 = vector.shape_cast %68 : vector<1x8x384xf32> to vector<8x384xf32>
    %cst_18 = arith.constant dense<0.000000e+00> : vector<8x384xf32>
    %70 = tpu.matmul %66, %0, %cst_18 {dimension_numbers = #tpu.dot_dimension_numbers<[1], [0], [0], [1], [0, 0, 1, 1], [], []>} : vector<8x128xf32>, vector<128x384xf32>, vector<8x384xf32> -> vector<8x384xf32>
    %71 = vector.extract_strided_slice %69 {offsets = [0, 0], sizes = [8, 128], strides = [1, 1]} : vector<8x384xf32> to vector<8x128xf32>
    %72 = vector.extract_strided_slice %69 {offsets = [0, 128], sizes = [8, 128], strides = [1, 1]} : vector<8x384xf32> to vector<8x128xf32>
    %73 = vector.extract_strided_slice %69 {offsets = [0, 256], sizes = [8, 128], strides = [1, 1]} : vector<8x384xf32> to vector<8x128xf32>
    %74 = vector.extract_strided_slice %70 {offsets = [0, 0], sizes = [8, 128], strides = [1, 1]} : vector<8x384xf32> to vector<8x128xf32>
    %75 = vector.extract_strided_slice %70 {offsets = [0, 128], sizes = [8, 128], strides = [1, 1]} : vector<8x384xf32> to vector<8x128xf32>
    %76 = vector.extract_strided_slice %70 {offsets = [0, 256], sizes = [8, 128], strides = [1, 1]} : vector<8x384xf32> to vector<8x128xf32>
    %77 = arith.addf %71, %74 : vector<8x128xf32>
    %78 = arith.negf %77 : vector<8x128xf32>
    %79 = math.exp %78 : vector<8x128xf32>
    %cst_19 = arith.constant 1.000000e+00 : f32
    %80 = vector.broadcast %cst_19 : f32 to vector<8x128xf32>
    %81 = arith.addf %80, %79 : vector<8x128xf32>
    %82 = arith.divf %80, %81 : vector<8x128xf32>
    %83 = arith.addf %72, %75 : vector<8x128xf32>
    %84 = arith.negf %83 : vector<8x128xf32>
    %85 = math.exp %84 : vector<8x128xf32>
    %cst_20 = arith.constant 1.000000e+00 : f32
    %86 = vector.broadcast %cst_20 : f32 to vector<8x128xf32>
    %87 = arith.addf %86, %85 : vector<8x128xf32>
    %88 = arith.divf %86, %87 : vector<8x128xf32>
    %89 = arith.addf %76, %3 : vector<8x128xf32>
    %90 = arith.mulf %82, %89 : vector<8x128xf32>
    %91 = arith.addf %73, %90 : vector<8x128xf32>
    %92 = math.tanh %91 : vector<8x128xf32>
    %cst_21 = arith.constant 1.000000e+00 : f32
    %93 = vector.broadcast %cst_21 : f32 to vector<8x128xf32>
    %94 = arith.subf %93, %88 : vector<8x128xf32>
    %95 = arith.mulf %94, %92 : vector<8x128xf32>
    %96 = arith.mulf %88, %66 : vector<8x128xf32>
    %97 = arith.addf %95, %96 : vector<8x128xf32>
    %c3_i32 = arith.constant 3 : i32
    %98 = arith.index_cast %c3_i32 : i32 to index
    %c0_22 = arith.constant 0 : index
    %c0_23 = arith.constant 0 : index
    %99 = vector.load %arg0[%98, %c0_22, %c0_23] : memref<8x8x384xf32, #tpu.memory_space<vmem>>, vector<1x8x384xf32>
    %100 = vector.shape_cast %99 : vector<1x8x384xf32> to vector<8x384xf32>
    %cst_24 = arith.constant dense<0.000000e+00> : vector<8x384xf32>
    %101 = tpu.matmul %97, %0, %cst_24 {dimension_numbers = #tpu.dot_dimension_numbers<[1], [0], [0], [1], [0, 0, 1, 1], [], []>} : vector<8x128xf32>, vector<128x384xf32>, vector<8x384xf32> -> vector<8x384xf32>
    %102 = vector.extract_strided_slice %100 {offsets = [0, 0], sizes = [8, 128], strides = [1, 1]} : vector<8x384xf32> to vector<8x128xf32>
    %103 = vector.extract_strided_slice %100 {offsets = [0, 128], sizes = [8, 128], strides = [1, 1]} : vector<8x384xf32> to vector<8x128xf32>
    %104 = vector.extract_strided_slice %100 {offsets = [0, 256], sizes = [8, 128], strides = [1, 1]} : vector<8x384xf32> to vector<8x128xf32>
    %105 = vector.extract_strided_slice %101 {offsets = [0, 0], sizes = [8, 128], strides = [1, 1]} : vector<8x384xf32> to vector<8x128xf32>
    %106 = vector.extract_strided_slice %101 {offsets = [0, 128], sizes = [8, 128], strides = [1, 1]} : vector<8x384xf32> to vector<8x128xf32>
    %107 = vector.extract_strided_slice %101 {offsets = [0, 256], sizes = [8, 128], strides = [1, 1]} : vector<8x384xf32> to vector<8x128xf32>
    %108 = arith.addf %102, %105 : vector<8x128xf32>
    %109 = arith.negf %108 : vector<8x128xf32>
    %110 = math.exp %109 : vector<8x128xf32>
    %cst_25 = arith.constant 1.000000e+00 : f32
    %111 = vector.broadcast %cst_25 : f32 to vector<8x128xf32>
    %112 = arith.addf %111, %110 : vector<8x128xf32>
    %113 = arith.divf %111, %112 : vector<8x128xf32>
    %114 = arith.addf %103, %106 : vector<8x128xf32>
    %115 = arith.negf %114 : vector<8x128xf32>
    %116 = math.exp %115 : vector<8x128xf32>
    %cst_26 = arith.constant 1.000000e+00 : f32
    %117 = vector.broadcast %cst_26 : f32 to vector<8x128xf32>
    %118 = arith.addf %117, %116 : vector<8x128xf32>
    %119 = arith.divf %117, %118 : vector<8x128xf32>
    %120 = arith.addf %107, %3 : vector<8x128xf32>
    %121 = arith.mulf %113, %120 : vector<8x128xf32>
    %122 = arith.addf %104, %121 : vector<8x128xf32>
    %123 = math.tanh %122 : vector<8x128xf32>
    %cst_27 = arith.constant 1.000000e+00 : f32
    %124 = vector.broadcast %cst_27 : f32 to vector<8x128xf32>
    %125 = arith.subf %124, %119 : vector<8x128xf32>
    %126 = arith.mulf %125, %123 : vector<8x128xf32>
    %127 = arith.mulf %119, %97 : vector<8x128xf32>
    %128 = arith.addf %126, %127 : vector<8x128xf32>
    %c4_i32 = arith.constant 4 : i32
    %129 = arith.index_cast %c4_i32 : i32 to index
    %c0_28 = arith.constant 0 : index
    %c0_29 = arith.constant 0 : index
    %130 = vector.load %arg0[%129, %c0_28, %c0_29] : memref<8x8x384xf32, #tpu.memory_space<vmem>>, vector<1x8x384xf32>
    %131 = vector.shape_cast %130 : vector<1x8x384xf32> to vector<8x384xf32>
    %cst_30 = arith.constant dense<0.000000e+00> : vector<8x384xf32>
    %132 = tpu.matmul %128, %0, %cst_30 {dimension_numbers = #tpu.dot_dimension_numbers<[1], [0], [0], [1], [0, 0, 1, 1], [], []>} : vector<8x128xf32>, vector<128x384xf32>, vector<8x384xf32> -> vector<8x384xf32>
    %133 = vector.extract_strided_slice %131 {offsets = [0, 0], sizes = [8, 128], strides = [1, 1]} : vector<8x384xf32> to vector<8x128xf32>
    %134 = vector.extract_strided_slice %131 {offsets = [0, 128], sizes = [8, 128], strides = [1, 1]} : vector<8x384xf32> to vector<8x128xf32>
    %135 = vector.extract_strided_slice %131 {offsets = [0, 256], sizes = [8, 128], strides = [1, 1]} : vector<8x384xf32> to vector<8x128xf32>
    %136 = vector.extract_strided_slice %132 {offsets = [0, 0], sizes = [8, 128], strides = [1, 1]} : vector<8x384xf32> to vector<8x128xf32>
    %137 = vector.extract_strided_slice %132 {offsets = [0, 128], sizes = [8, 128], strides = [1, 1]} : vector<8x384xf32> to vector<8x128xf32>
    %138 = vector.extract_strided_slice %132 {offsets = [0, 256], sizes = [8, 128], strides = [1, 1]} : vector<8x384xf32> to vector<8x128xf32>
    %139 = arith.addf %133, %136 : vector<8x128xf32>
    %140 = arith.negf %139 : vector<8x128xf32>
    %141 = math.exp %140 : vector<8x128xf32>
    %cst_31 = arith.constant 1.000000e+00 : f32
    %142 = vector.broadcast %cst_31 : f32 to vector<8x128xf32>
    %143 = arith.addf %142, %141 : vector<8x128xf32>
    %144 = arith.divf %142, %143 : vector<8x128xf32>
    %145 = arith.addf %134, %137 : vector<8x128xf32>
    %146 = arith.negf %145 : vector<8x128xf32>
    %147 = math.exp %146 : vector<8x128xf32>
    %cst_32 = arith.constant 1.000000e+00 : f32
    %148 = vector.broadcast %cst_32 : f32 to vector<8x128xf32>
    %149 = arith.addf %148, %147 : vector<8x128xf32>
    %150 = arith.divf %148, %149 : vector<8x128xf32>
    %151 = arith.addf %138, %3 : vector<8x128xf32>
    %152 = arith.mulf %144, %151 : vector<8x128xf32>
    %153 = arith.addf %135, %152 : vector<8x128xf32>
    %154 = math.tanh %153 : vector<8x128xf32>
    %cst_33 = arith.constant 1.000000e+00 : f32
    %155 = vector.broadcast %cst_33 : f32 to vector<8x128xf32>
    %156 = arith.subf %155, %150 : vector<8x128xf32>
    %157 = arith.mulf %156, %154 : vector<8x128xf32>
    %158 = arith.mulf %150, %128 : vector<8x128xf32>
    %159 = arith.addf %157, %158 : vector<8x128xf32>
    %c5_i32 = arith.constant 5 : i32
    %160 = arith.index_cast %c5_i32 : i32 to index
    %c0_34 = arith.constant 0 : index
    %c0_35 = arith.constant 0 : index
    %161 = vector.load %arg0[%160, %c0_34, %c0_35] : memref<8x8x384xf32, #tpu.memory_space<vmem>>, vector<1x8x384xf32>
    %162 = vector.shape_cast %161 : vector<1x8x384xf32> to vector<8x384xf32>
    %cst_36 = arith.constant dense<0.000000e+00> : vector<8x384xf32>
    %163 = tpu.matmul %159, %0, %cst_36 {dimension_numbers = #tpu.dot_dimension_numbers<[1], [0], [0], [1], [0, 0, 1, 1], [], []>} : vector<8x128xf32>, vector<128x384xf32>, vector<8x384xf32> -> vector<8x384xf32>
    %164 = vector.extract_strided_slice %162 {offsets = [0, 0], sizes = [8, 128], strides = [1, 1]} : vector<8x384xf32> to vector<8x128xf32>
    %165 = vector.extract_strided_slice %162 {offsets = [0, 128], sizes = [8, 128], strides = [1, 1]} : vector<8x384xf32> to vector<8x128xf32>
    %166 = vector.extract_strided_slice %162 {offsets = [0, 256], sizes = [8, 128], strides = [1, 1]} : vector<8x384xf32> to vector<8x128xf32>
    %167 = vector.extract_strided_slice %163 {offsets = [0, 0], sizes = [8, 128], strides = [1, 1]} : vector<8x384xf32> to vector<8x128xf32>
    %168 = vector.extract_strided_slice %163 {offsets = [0, 128], sizes = [8, 128], strides = [1, 1]} : vector<8x384xf32> to vector<8x128xf32>
    %169 = vector.extract_strided_slice %163 {offsets = [0, 256], sizes = [8, 128], strides = [1, 1]} : vector<8x384xf32> to vector<8x128xf32>
    %170 = arith.addf %164, %167 : vector<8x128xf32>
    %171 = arith.negf %170 : vector<8x128xf32>
    %172 = math.exp %171 : vector<8x128xf32>
    %cst_37 = arith.constant 1.000000e+00 : f32
    %173 = vector.broadcast %cst_37 : f32 to vector<8x128xf32>
    %174 = arith.addf %173, %172 : vector<8x128xf32>
    %175 = arith.divf %173, %174 : vector<8x128xf32>
    %176 = arith.addf %165, %168 : vector<8x128xf32>
    %177 = arith.negf %176 : vector<8x128xf32>
    %178 = math.exp %177 : vector<8x128xf32>
    %cst_38 = arith.constant 1.000000e+00 : f32
    %179 = vector.broadcast %cst_38 : f32 to vector<8x128xf32>
    %180 = arith.addf %179, %178 : vector<8x128xf32>
    %181 = arith.divf %179, %180 : vector<8x128xf32>
    %182 = arith.addf %169, %3 : vector<8x128xf32>
    %183 = arith.mulf %175, %182 : vector<8x128xf32>
    %184 = arith.addf %166, %183 : vector<8x128xf32>
    %185 = math.tanh %184 : vector<8x128xf32>
    %cst_39 = arith.constant 1.000000e+00 : f32
    %186 = vector.broadcast %cst_39 : f32 to vector<8x128xf32>
    %187 = arith.subf %186, %181 : vector<8x128xf32>
    %188 = arith.mulf %187, %185 : vector<8x128xf32>
    %189 = arith.mulf %181, %159 : vector<8x128xf32>
    %190 = arith.addf %188, %189 : vector<8x128xf32>
    %c6_i32 = arith.constant 6 : i32
    %191 = arith.index_cast %c6_i32 : i32 to index
    %c0_40 = arith.constant 0 : index
    %c0_41 = arith.constant 0 : index
    %192 = vector.load %arg0[%191, %c0_40, %c0_41] : memref<8x8x384xf32, #tpu.memory_space<vmem>>, vector<1x8x384xf32>
    %193 = vector.shape_cast %192 : vector<1x8x384xf32> to vector<8x384xf32>
    %cst_42 = arith.constant dense<0.000000e+00> : vector<8x384xf32>
    %194 = tpu.matmul %190, %0, %cst_42 {dimension_numbers = #tpu.dot_dimension_numbers<[1], [0], [0], [1], [0, 0, 1, 1], [], []>} : vector<8x128xf32>, vector<128x384xf32>, vector<8x384xf32> -> vector<8x384xf32>
    %195 = vector.extract_strided_slice %193 {offsets = [0, 0], sizes = [8, 128], strides = [1, 1]} : vector<8x384xf32> to vector<8x128xf32>
    %196 = vector.extract_strided_slice %193 {offsets = [0, 128], sizes = [8, 128], strides = [1, 1]} : vector<8x384xf32> to vector<8x128xf32>
    %197 = vector.extract_strided_slice %193 {offsets = [0, 256], sizes = [8, 128], strides = [1, 1]} : vector<8x384xf32> to vector<8x128xf32>
    %198 = vector.extract_strided_slice %194 {offsets = [0, 0], sizes = [8, 128], strides = [1, 1]} : vector<8x384xf32> to vector<8x128xf32>
    %199 = vector.extract_strided_slice %194 {offsets = [0, 128], sizes = [8, 128], strides = [1, 1]} : vector<8x384xf32> to vector<8x128xf32>
    %200 = vector.extract_strided_slice %194 {offsets = [0, 256], sizes = [8, 128], strides = [1, 1]} : vector<8x384xf32> to vector<8x128xf32>
    %201 = arith.addf %195, %198 : vector<8x128xf32>
    %202 = arith.negf %201 : vector<8x128xf32>
    %203 = math.exp %202 : vector<8x128xf32>
    %cst_43 = arith.constant 1.000000e+00 : f32
    %204 = vector.broadcast %cst_43 : f32 to vector<8x128xf32>
    %205 = arith.addf %204, %203 : vector<8x128xf32>
    %206 = arith.divf %204, %205 : vector<8x128xf32>
    %207 = arith.addf %196, %199 : vector<8x128xf32>
    %208 = arith.negf %207 : vector<8x128xf32>
    %209 = math.exp %208 : vector<8x128xf32>
    %cst_44 = arith.constant 1.000000e+00 : f32
    %210 = vector.broadcast %cst_44 : f32 to vector<8x128xf32>
    %211 = arith.addf %210, %209 : vector<8x128xf32>
    %212 = arith.divf %210, %211 : vector<8x128xf32>
    %213 = arith.addf %200, %3 : vector<8x128xf32>
    %214 = arith.mulf %206, %213 : vector<8x128xf32>
    %215 = arith.addf %197, %214 : vector<8x128xf32>
    %216 = math.tanh %215 : vector<8x128xf32>
    %cst_45 = arith.constant 1.000000e+00 : f32
    %217 = vector.broadcast %cst_45 : f32 to vector<8x128xf32>
    %218 = arith.subf %217, %212 : vector<8x128xf32>
    %219 = arith.mulf %218, %216 : vector<8x128xf32>
    %220 = arith.mulf %212, %190 : vector<8x128xf32>
    %221 = arith.addf %219, %220 : vector<8x128xf32>
    %c7_i32 = arith.constant 7 : i32
    %222 = arith.index_cast %c7_i32 : i32 to index
    %c0_46 = arith.constant 0 : index
    %c0_47 = arith.constant 0 : index
    %223 = vector.load %arg0[%222, %c0_46, %c0_47] : memref<8x8x384xf32, #tpu.memory_space<vmem>>, vector<1x8x384xf32>
    %224 = vector.shape_cast %223 : vector<1x8x384xf32> to vector<8x384xf32>
    %cst_48 = arith.constant dense<0.000000e+00> : vector<8x384xf32>
    %225 = tpu.matmul %221, %0, %cst_48 {dimension_numbers = #tpu.dot_dimension_numbers<[1], [0], [0], [1], [0, 0, 1, 1], [], []>} : vector<8x128xf32>, vector<128x384xf32>, vector<8x384xf32> -> vector<8x384xf32>
    %226 = vector.extract_strided_slice %224 {offsets = [0, 0], sizes = [8, 128], strides = [1, 1]} : vector<8x384xf32> to vector<8x128xf32>
    %227 = vector.extract_strided_slice %224 {offsets = [0, 128], sizes = [8, 128], strides = [1, 1]} : vector<8x384xf32> to vector<8x128xf32>
    %228 = vector.extract_strided_slice %224 {offsets = [0, 256], sizes = [8, 128], strides = [1, 1]} : vector<8x384xf32> to vector<8x128xf32>
    %229 = vector.extract_strided_slice %225 {offsets = [0, 0], sizes = [8, 128], strides = [1, 1]} : vector<8x384xf32> to vector<8x128xf32>
    %230 = vector.extract_strided_slice %225 {offsets = [0, 128], sizes = [8, 128], strides = [1, 1]} : vector<8x384xf32> to vector<8x128xf32>
    %231 = vector.extract_strided_slice %225 {offsets = [0, 256], sizes = [8, 128], strides = [1, 1]} : vector<8x384xf32> to vector<8x128xf32>
    %232 = arith.addf %226, %229 : vector<8x128xf32>
    %233 = arith.negf %232 : vector<8x128xf32>
    %234 = math.exp %233 : vector<8x128xf32>
    %cst_49 = arith.constant 1.000000e+00 : f32
    %235 = vector.broadcast %cst_49 : f32 to vector<8x128xf32>
    %236 = arith.addf %235, %234 : vector<8x128xf32>
    %237 = arith.divf %235, %236 : vector<8x128xf32>
    %238 = arith.addf %227, %230 : vector<8x128xf32>
    %239 = arith.negf %238 : vector<8x128xf32>
    %240 = math.exp %239 : vector<8x128xf32>
    %cst_50 = arith.constant 1.000000e+00 : f32
    %241 = vector.broadcast %cst_50 : f32 to vector<8x128xf32>
    %242 = arith.addf %241, %240 : vector<8x128xf32>
    %243 = arith.divf %241, %242 : vector<8x128xf32>
    %244 = arith.addf %231, %3 : vector<8x128xf32>
    %245 = arith.mulf %237, %244 : vector<8x128xf32>
    %246 = arith.addf %228, %245 : vector<8x128xf32>
    %247 = math.tanh %246 : vector<8x128xf32>
    %cst_51 = arith.constant 1.000000e+00 : f32
    %248 = vector.broadcast %cst_51 : f32 to vector<8x128xf32>
    %249 = arith.subf %248, %243 : vector<8x128xf32>
    %250 = arith.mulf %249, %247 : vector<8x128xf32>
    %251 = arith.mulf %243, %221 : vector<8x128xf32>
    %252 = arith.addf %250, %251 : vector<8x128xf32>
    %c8_i32 = arith.constant 8 : i32
    %c0_52 = arith.constant 0 : index
    %c0_53 = arith.constant 0 : index
    %253 = vector.load %arg7[%c0_52, %c0_53] : memref<8x128xf32, #tpu.memory_space<vmem>>, vector<8x128xf32>
    tpu.vector_store %arg7[%c0_52, %c0_53], %252 {strides = array<i32>} : memref<8x128xf32, #tpu.memory_space<vmem>>, vector<8x128xf32>,
    %c0_54 = arith.constant 0 : index
    %c0_55 = arith.constant 0 : index
    %254 = vector.load %arg4[%c0_54, %c0_55] : memref<128x128xf32, #tpu.memory_space<vmem>>, vector<128x128xf32>
    %cst_56 = arith.constant dense<0.000000e+00> : vector<8x128xf32>
    %255 = tpu.matmul %252, %254, %cst_56 {dimension_numbers = #tpu.dot_dimension_numbers<[1], [0], [0], [1], [0, 0, 1, 1], [], []>} : vector<8x128xf32>, vector<128x128xf32>, vector<8x128xf32> -> vector<8x128xf32>
    %c0_57 = arith.constant 0 : index
    %c0_58 = arith.constant 0 : index
    %256 = vector.load %arg5[%c0_57, %c0_58] : memref<1x128xf32, #tpu.memory_space<vmem>>, vector<1x128xf32>
    %257 = vector.broadcast %256 : vector<1x128xf32> to vector<8x128xf32>
    %258 = arith.addf %255, %257 : vector<8x128xf32>
    %c0_59 = arith.constant 0 : index
    %c0_60 = arith.constant 0 : index
    %259 = vector.load %arg6[%c0_59, %c0_60] : memref<8x128xf32, #tpu.memory_space<vmem>>, vector<8x128xf32>
    tpu.vector_store %arg6[%c0_59, %c0_60], %258 {strides = array<i32>} : memref<8x128xf32, #tpu.memory_space<vmem>>, vector<8x128xf32>,
    return
  }
}

</mosaic_0001>

<bundles_post_ra>
// kernel: tpu_custom_call.1
= control target key start
LH: loop header
LB: loop body
LE: loop exit
PB: predicated region body
PF: predicated region fallthrough
CT: control target
= control target key end

     0   :  { %13 = vsyncpa [#allocation3], 0  ;;  %s3231_s0 = inlined_call_operand.hbm [shape: f32[8,8,384], index: 0, kind: input, shape index: {}]   ;;  %s3232_s1 = inlined_call_operand.hbm [shape: f32[8,128], index: 1, kind: input, shape index: {}]   ;;  %s3233_s2 = inlined_call_operand.hbm [shape: f32[128,384], index: 2, kind: input, shape index: {}]   ;;  %s3234_s3 = inlined_call_operand.vmem [shape: f32[1,128], index: 3, kind: input, shape index: {}]   ;;  %s3235_s4 = inlined_call_operand.hbm [shape: f32[128,128], index: 4, kind: input, shape index: {}]   ;;  %s3236_s5 = inlined_call_operand.vmem [shape: f32[1,128], index: 5, kind: input, shape index: {}]   ;;  %s3237_s6 = inlined_call_operand.hbm [shape: f32[8,128], index: 6, kind: output, shape index: {0}]   ;;  %s3238_s7 = inlined_call_operand.hbm [shape: f32[8,128], index: 7, kind: output, shape index: {1}]  }
   0x1   :  { %14 = vsyncpa [#allocation6], 0 }
   0x2   :  { %15 = vsyncpa [#allocation9], 0 }
   0x3   :  { %16 = vsyncpa [#allocation4], 0 }
   0x4   :  { %17 = vsyncpa [#allocation12], 0  ;;  %s2354_s24 = smov [#allocation5]   ;;  %s2355_s26 = smov [#allocation2]  }
   0x5   :  { %s36_s25 = sshll.u32 %s2354_s24, 4  ;;  %s23_s27 = sshll.u32 %s2355_s26, 4  ;;  %s37_s25 = int_to_ptr.vmem [resolvable:$true] %s36_s25  ;;  %s24_s27 = int_to_ptr.vmem [resolvable:$true] %s23_s27 }
   0x6   :  { %s2232_s28 = scalar_lea.vmem %s37_s25, 128  ;;  %p2237_p1 = scmp.lt.s32.totalorder %s37_s25, %s37_s25 }
   0x7   :  { %p2233_p0 = scmp.ne.s32.totalorder %s37_s25, %s2232_s28  ;;  %p2238_p2 = scmp.lt.s32.totalorder %s2232_s28, %s2232_s28 }
   0x9   :  { %p2239_p3 = por %p2238_p2, %p2237_p1 }
   0xb   :  { %p2240_p4 = pnand %p2239_p3, %p2233_p0 }
   0xd   :  { %2243 = shalt.err (!%p2240_p4)
}
   0xe   :  { %39 = dma.hbm_to_vmem [thread:$0]  %s3232_s1, 128, %s37_s25, [#allocation6]  }
   0xf   :  { %s2252_s8 = scalar_lea.vmem %s24_s27, 3072  ;;  %p2257_p6 = scmp.lt.s32.totalorder %s24_s27, %s24_s27 }
  0x10   :  { %p2253_p5 = scmp.ne.s32.totalorder %s24_s27, %s2252_s8  ;;  %p2258_p7 = scmp.lt.s32.totalorder %s2252_s8, %s2252_s8 }
  0x12   :  { %p2259_p8 = por %p2258_p7, %p2257_p6 }
  0x14   :  { %p2260_p9 = pnand %p2259_p8, %p2253_p5 }
  0x16   :  { %2263 = shalt.err (!%p2260_p9)
}
  0x17   :  { %s2356_s9 = smov 384   ;;  %s2357_s10 = smov 24  }
  0x18   :  { %29 = dma.hbm_to_vmem [thread:$0]  %s3231_s0, 3072, %s24_s27, [#allocation3], %s2356_s9, %s2356_s9, %s2357_s10  }
  0x19   :  { %s2358_s13 = smov [#allocation7]   ;;  %s2359_s15 = smov [#allocation8]  }
  0x1a   :  { %s45_s14 = sshll.u32 %s2358_s13, 4  ;;  %s59_s16 = sshll.u32 %s2359_s15, 4  ;;  %s46_s14 = int_to_ptr.vmem [resolvable:$true] %s45_s14  ;;  %s60_s16 = int_to_ptr.vmem [resolvable:$true] %s59_s16 }
  0x1b   :  { %s2272_s1 = scalar_lea.vmem %s46_s14, 6144  ;;  %p2277_p11 = scmp.lt.s32.totalorder %s46_s14, %s46_s14 }
  0x1c   :  { %p2273_p10 = scmp.ne.s32.totalorder %s46_s14, %s2272_s1  ;;  %p2278_p12 = scmp.lt.s32.totalorder %s2272_s1, %s2272_s1 }
  0x1e   :  { %p2279_p13 = por %p2278_p12, %p2277_p11 }
  0x20   :  { %p2280_p0 = pnand %p2279_p13, %p2273_p10 }
  0x22   :  { %2283 = shalt.err (!%p2280_p0)
}
  0x23   :  { %51 = dma.hbm_to_vmem [thread:$0]  %s3233_s2, 6144, %s46_s14, [#allocation6], %s2356_s9, %s2356_s9, %s2357_s10  }
  0x24   :  { %s2292_s19 = scalar_lea.vmem %s60_s16, 2048  ;;  %p2297_p2 = scmp.lt.s32.totalorder %s60_s16, %s60_s16 }
  0x25   :  { %p2293_p1 = scmp.ne.s32.totalorder %s60_s16, %s2292_s19  ;;  %p2298_p3 = scmp.lt.s32.totalorder %s2292_s19, %s2292_s19 }
  0x27   :  { %p2299_p4 = por %p2298_p3, %p2297_p2 }
  0x29   :  { %p2300_p5 = pnand %p2299_p4, %p2293_p1 }
  0x2b   :  { %2303 = shalt.err (!%p2300_p5)
}
  0x2c   :  { %s2360_s0 = smov 128   ;;  %s2361_s20 = smov 8  }
  0x2d   :  { %65 = dma.hbm_to_vmem [thread:$0]  %s3235_s4, 2048, %s60_s16, [#allocation9], %s2360_s0, %s2360_s0, %s2361_s20  }
  0x2e   :  { %2344 = dma.done.wait [#allocation3], 3072  }
  0x2f   :  { %2345 = vsyncadd [#allocation3], 4294964224 }
  0x30   :  { %2346 = dma.done.wait [#allocation6], 6272  }
  0x31   :  { %2347 = vsyncadd [#allocation6], 4294961024 }
  0x32   :  { %2348 = dma.done.wait [#allocation9], 2048  }
  0x33   :  { %2349 = vsyncadd [#allocation9], 4294965248  ;;  %v3239_v0 = vmov 0.0   ;;  %vm2363_vm0 = vmmov 0   ;;  %v2422_v1 = vld [vmem:[#allocation7 + $0x170] sm:$0xff]  ;;  %v2424_v2 = vld [vmem:[#allocation7 + $0x168] sm:$0xff] }
  0x34   :  { %1768 = vmatprep.subr.mxu1 %v3239_v0  ;;  %203 = vmatprep.mubr.f32.mxu0 %v3239_v0  ;;  %3255 = vst [vmem:[#allocation18_spill] sm:$0xff] %v2422_v1  ;;  %v2426_v3 = vld [vmem:[#allocation7 + $0x158] sm:$0xff]  ;;  %v2429_v4 = vld [vmem:[#allocation7 + $0x150] sm:$0xff]  ;;  %v2432_v5 = vld [vmem:[#allocation7 + $0x140] sm:$0xff] }
  0x35   :  { %1800 = vmatprep.mubr.msk.f32.mxu1 %vm2363_vm0, %v3239_v0  ;;  %139 = vmatprep.subr.mxu0 %v2422_v1  ;;  %v2435_v6 = vld [vmem:[#allocation7 + $0x138] sm:$0xff]  ;;  %v2438_v7 = vld [vmem:[#allocation7 + $0x128] sm:$0xff]  ;;  %v2441_v8 = vld [vmem:[#allocation7 + $0x120] sm:$0xff] }
  0x36   :  { %140 = vmatpush1.msra.mxu0 %v2424_v2  ;;  %v2444_v9 = vld [vmem:[#allocation7 + $0x110] sm:$0xff]  ;;  %v2447_v10 = vld [vmem:[#allocation7 + $0x108] sm:$0xff]  ;;  %v2450_v11 = vld [vmem:[#allocation7 + $0xf8] sm:$0xff] }
  0x37   :  { %141 = vmatprep.subr.mxu0 %v2426_v3  ;;  %v2453_v12 = vld [vmem:[#allocation7 + $0xf0] sm:$0xff]  ;;  %v2456_v13 = vld [vmem:[#allocation7 + $0xe0] sm:$0xff]  ;;  %v2458_v14 = vld [vmem:[#allocation7 + $0x178] sm:$0xff] }
  0x38   :  { %142 = vmatpush1.msra.mxu0 %v2429_v4  ;;  %v2461_v15 = vld [vmem:[#allocation7 + $0xd8] sm:$0xff]  ;;  %1769 = vmatpush3.msra.mxu1 %v2458_v14  ;;  %v2464_v16 = vld [vmem:[#allocation7 + $0x160] sm:$0xff]  ;;  %v2467_v17 = vld [vmem:[#allocation7 + $0xc8] sm:$0xff] }
  0x39   :  { %143 = vmatprep.subr.mxu0 %v2432_v5  ;;  %1770 = vmatprep.subr.mxu1 %v3239_v0  ;;  %v2470_v18 = vld [vmem:[#allocation7 + $0x148] sm:$0xff]  ;;  %v2473_v19 = vld [vmem:[#allocation7 + $0xc0] sm:$0xff]  ;;  %v2477_v20 = vld [vmem:[#allocation7 + $0xb0] sm:$0xff] }
  0x3a   :  { %144 = vmatpush1.msra.mxu0 %v2435_v6  ;;  %1771 = vmatpush3.msra.mxu1 %v2464_v16  ;;  %v2480_v21 = vld [vmem:[#allocation7 + $0x130] sm:$0xff]  ;;  %v2483_v22 = vld [vmem:[#allocation7 + $0xa8] sm:$0xff]  ;;  %v2487_v23 = vld [vmem:[#allocation7 + $0x98] sm:$0xff] }
  0x3b   :  { %145 = vmatprep.subr.mxu0 %v2438_v7  ;;  %1772 = vmatprep.subr.mxu1 %v3239_v0  ;;  %v2490_v24 = vld [vmem:[#allocation7 + $0x118] sm:$0xff]  ;;  %v2493_v25 = vld [vmem:[#allocation7 + $0x90] sm:$0xff]  ;;  %v2497_v26 = vld [vmem:[#allocation7 + $0x80] sm:$0xff] }
  0x3c   :  { %146 = vmatpush1.msra.mxu0 %v2441_v8  ;;  %1773 = vmatpush3.msra.mxu1 %v2470_v18  ;;  %v2500_v27 = vld [vmem:[#allocation7 + $0x100] sm:$0xff]  ;;  %v2503_v28 = vld [vmem:[#allocation7 + $0x78] sm:$0xff]  ;;  %v2507_v29 = vld [vmem:[#allocation7 + $0x68] sm:$0xff] }
  0x3d   :  { %147 = vmatprep.subr.mxu0 %v2444_v9  ;;  %1774 = vmatprep.subr.mxu1 %v3239_v0  ;;  %v2510_v30 = vld [vmem:[#allocation7 + $0xe8] sm:$0xff]  ;;  %v2513_v31 = vld [vmem:[#allocation7 + $0x60] sm:$0xff]  ;;  %v2517_v32 = vld [vmem:[#allocation7 + $0x50] sm:$0xff] }
  0x3e   :  { %148 = vmatpush1.msra.mxu0 %v2447_v10  ;;  %1775 = vmatpush3.msra.mxu1 %v2480_v21  ;;  %v2520_v33 = vld [vmem:[#allocation7 + $0xd0] sm:$0xff]  ;;  %v2523_v34 = vld [vmem:[#allocation7 + $0x48] sm:$0xff]  ;;  %v2527_v35 = vld [vmem:[#allocation7 + $0x38] sm:$0xff] }
  0x3f   :  { %149 = vmatprep.subr.mxu0 %v2450_v11  ;;  %1776 = vmatprep.subr.mxu1 %v3239_v0  ;;  %v2530_v36 = vld [vmem:[#allocation7 + $0xb8] sm:$0xff]  ;;  %v2533_v37 = vld [vmem:[#allocation7 + $0x30] sm:$0xff]  ;;  %v2537_v38 = vld [vmem:[#allocation7 + $0x20] sm:$0xff] }
  0x40   :  { %150 = vmatpush1.msra.mxu0 %v2453_v12  ;;  %1777 = vmatpush3.msra.mxu1 %v2490_v24  ;;  %v2540_v39 = vld [vmem:[#allocation7 + $0xa0] sm:$0xff]  ;;  %v2543_v40 = vld [vmem:[#allocation7 + $0x18] sm:$0xff]  ;;  %v2547_v41 = vld [vmem:[#allocation7 + $0x8] sm:$0xff] }
  0x41   :  { %151 = vmatprep.subr.mxu0 %v2456_v13  ;;  %1778 = vmatprep.subr.mxu1 %v3239_v0  ;;  %3256 = vst [vmem:[#allocation19_spill] sm:$0xff] %v2547_v41  ;;  %v2550_v42 = vld [vmem:[#allocation7 + $0x88] sm:$0xff]  ;;  %v2553_v43 = vld [vmem:[#allocation7] sm:$0xff]  ;;  %v2557_v44 = vld [vmem:[#allocation5] sm:$0xff] }
  0x42   :  { %152 = vmatpush1.msra.mxu0 %v2461_v15  ;;  %1779 = vmatpush3.msra.mxu1 %v2500_v27  ;;  %3257 = vst [vmem:[#allocation20_spill] sm:$0xff] %v2553_v43  ;;  %v2560_v45 = vld [vmem:[#allocation7 + $0x70] sm:$0xff]  ;;  %v2566_v46 = vld [vmem:[#allocation7 + $0x58] sm:$0xff]  ;;  %v2571_v47 = vld [vmem:[#allocation7 + $0x40] sm:$0xff] }
  0x43   :  { %153 = vmatprep.subr.mxu0 %v2467_v17  ;;  %1780 = vmatprep.subr.mxu1 %v3239_v0  ;;  %v2577_v48 = vld [vmem:[#allocation7 + $0x28] sm:$0xff]  ;;  %v2583_v49 = vld [vmem:[#allocation7 + $0x10] sm:$0xff]  ;;  %v136_v50 = vld [vmem:[#allocation2] sm:$0xff] }
  0x44   :  { %154 = vmatpush1.msra.mxu0 %v2473_v19  ;;  %1781 = vmatpush3.msra.mxu1 %v2510_v30  ;;  %3258 = vst [vmem:[#allocation21_spill] sm:$0xff] %v2577_v48  ;;  %3259 = vst [vmem:[#allocation22_spill] sm:$0xff] %v2583_v49  ;;  %v137_v54 = vld [vmem:[#allocation2 + $0x8] sm:$0xff]  ;;  %v2657_v63 = vld [vmem:[%s3234_s3] ss:$0 sm:$0xff] }
  0x45   :  { %155 = vmatprep.subr.mxu0 %v2477_v20  ;;  %1782 = vmatprep.subr.mxu1 %v3239_v0 }
  0x46   :  { %156 = vmatpush1.msra.mxu0 %v2483_v22  ;;  %1783 = vmatpush3.msra.mxu1 %v2520_v33 }
  0x47   :  { %157 = vmatprep.subr.mxu0 %v2487_v23  ;;  %1784 = vmatprep.subr.mxu1 %v3239_v0 }
  0x48   :  { %158 = vmatpush1.msra.mxu0 %v2493_v25  ;;  %1785 = vmatpush3.msra.mxu1 %v2530_v36 }
  0x49   :  { %159 = vmatprep.subr.mxu0 %v2497_v26  ;;  %1786 = vmatprep.subr.mxu1 %v3239_v0 }
  0x4a   :  { %160 = vmatpush1.msra.mxu0 %v2503_v28  ;;  %1787 = vmatpush3.msra.mxu1 %v2540_v39 }
  0x4b   :  { %161 = vmatprep.subr.mxu0 %v2507_v29  ;;  %1788 = vmatprep.subr.mxu1 %v3239_v0 }
  0x4c   :  { %162 = vmatpush1.msra.mxu0 %v2513_v31  ;;  %1789 = vmatpush3.msra.mxu1 %v2550_v42 }
  0x4d   :  { %163 = vmatprep.subr.mxu0 %v2517_v32  ;;  %1790 = vmatprep.subr.mxu1 %v3239_v0 }
  0x4e   :  { %164 = vmatpush1.msra.mxu0 %v2523_v34  ;;  %1791 = vmatpush3.msra.mxu1 %v2560_v45 }
  0x4f   :  { %165 = vmatprep.subr.mxu0 %v2527_v35  ;;  %1792 = vmatprep.subr.mxu1 %v3239_v0 }
  0x50   :  { %166 = vmatpush1.msra.mxu0 %v2533_v37  ;;  %1793 = vmatpush3.msra.mxu1 %v2566_v46 }
  0x51   :  { %167 = vmatprep.subr.mxu0 %v2537_v38  ;;  %1794 = vmatprep.subr.mxu1 %v3239_v0 }
  0x52   :  { %168 = vmatpush1.msra.mxu0 %v2543_v40  ;;  %1795 = vmatpush3.msra.mxu1 %v2571_v47 }
  0x53   :  { %169 = vmatprep.subr.mxu0 %v2547_v41  ;;  %1796 = vmatprep.subr.mxu1 %v3239_v0 }
  0x54   :  { %170 = vmatpush1.msra.mxu0 %v2553_v43  ;;  %1797 = vmatpush3.msra.mxu1 %v2577_v48 }
  0x55   :  { %204 = vmatmul.mubr.f32.vlgmr.msra.gmra.mxu0 %v2557_v44  ;;  %306 = vmatprep.subr.mxu0 %v2422_v1 }
  0x56   :  { %307 = vmatpush1.msra.mxu0 %v2424_v2  ;;  %1798 = vmatprep.subr.mxu1 %v3239_v0 }
  0x57   :  { %308 = vmatprep.subr.mxu0 %v2426_v3  ;;  %1799 = vmatpush3.msra.mxu1 %v2583_v49 }
  0x58   :  { %309 = vmatpush1.msra.mxu0 %v2429_v4  ;;  %1801 = vmatmul.mubr.f32.vlgmr.msra.gmra.mxu1 %v2557_v44 }
  0x59   :  { %310 = vmatprep.subr.mxu0 %v2432_v5  ;;  %1803 = vmatprep.subr.mxu1 %v3239_v0 }
  0x5a   :  { %311 = vmatpush1.msra.mxu0 %v2435_v6  ;;  %1804 = vmatpush3.msra.mxu1 %v2458_v14 }
  0x5b   :  { %312 = vmatprep.subr.mxu0 %v2438_v7  ;;  %1805 = vmatprep.subr.mxu1 %v3239_v0 }
  0x5c   :  { %313 = vmatpush1.msra.mxu0 %v2441_v8  ;;  %1806 = vmatpush3.msra.mxu1 %v2464_v16 }
  0x5d   :  { %314 = vmatprep.subr.mxu0 %v2444_v9  ;;  %1807 = vmatprep.subr.mxu1 %v3239_v0 }
  0x5e   :  { %315 = vmatpush1.msra.mxu0 %v2447_v10  ;;  %1808 = vmatpush3.msra.mxu1 %v2470_v18 }
  0x5f   :  { %316 = vmatprep.subr.mxu0 %v2450_v11  ;;  %1809 = vmatprep.subr.mxu1 %v3239_v0 }
  0x60   :  { %317 = vmatpush1.msra.mxu0 %v2453_v12  ;;  %1810 = vmatpush3.msra.mxu1 %v2480_v21 }
  0x61   :  { %318 = vmatprep.subr.mxu0 %v2456_v13  ;;  %1811 = vmatprep.subr.mxu1 %v3239_v0 }
  0x62   :  { %319 = vmatpush1.msra.mxu0 %v2461_v15  ;;  %1812 = vmatpush3.msra.mxu1 %v2490_v24 }
  0x63   :  { %320 = vmatprep.subr.mxu0 %v2467_v17  ;;  %1813 = vmatprep.subr.mxu1 %v3239_v0 }
  0x64   :  { %321 = vmatpush1.msra.mxu0 %v2473_v19  ;;  %1814 = vmatpush3.msra.mxu1 %v2500_v27 }
  0x65   :  { %322 = vmatprep.subr.mxu0 %v2477_v20  ;;  %1815 = vmatprep.subr.mxu1 %v3239_v0 }
  0x66   :  { %323 = vmatpush1.msra.mxu0 %v2483_v22  ;;  %1816 = vmatpush3.msra.mxu1 %v2510_v30 }
  0x67   :  { %324 = vmatprep.subr.mxu0 %v2487_v23  ;;  %1817 = vmatprep.subr.mxu1 %v3239_v0 }
  0x68   :  { %325 = vmatpush1.msra.mxu0 %v2493_v25  ;;  %1818 = vmatpush3.msra.mxu1 %v2520_v33 }
  0x69   :  { %326 = vmatprep.subr.mxu0 %v2497_v26  ;;  %1819 = vmatprep.subr.mxu1 %v3239_v0 }
  0x6a   :  { %327 = vmatpush1.msra.mxu0 %v2503_v28  ;;  %1820 = vmatpush3.msra.mxu1 %v2530_v36 }
  0x6b   :  { %328 = vmatprep.subr.mxu0 %v2507_v29  ;;  %1821 = vmatprep.subr.mxu1 %v3239_v0 }
  0x6c   :  { %329 = vmatpush1.msra.mxu0 %v2513_v31  ;;  %1822 = vmatpush3.msra.mxu1 %v2540_v39 }
  0x6d   :  { %330 = vmatprep.subr.mxu0 %v2517_v32  ;;  %1823 = vmatprep.subr.mxu1 %v3239_v0 }
  0x6e   :  { %331 = vmatpush1.msra.mxu0 %v2523_v34  ;;  %1824 = vmatpush3.msra.mxu1 %v2550_v42 }
  0x6f   :  { %332 = vmatprep.subr.mxu0 %v2527_v35  ;;  %1825 = vmatprep.subr.mxu1 %v3239_v0 }
  0x70   :  { %333 = vmatpush1.msra.mxu0 %v2533_v37  ;;  %1826 = vmatpush3.msra.mxu1 %v2560_v45 }
  0x71   :  { %334 = vmatprep.subr.mxu0 %v2537_v38  ;;  %1827 = vmatprep.subr.mxu1 %v3239_v0 }
  0x72   :  { %335 = vmatpush1.msra.mxu0 %v2543_v40  ;;  %1828 = vmatpush3.msra.mxu1 %v2566_v46 }
  0x73   :  { %336 = vmatprep.subr.mxu0 %v2547_v41  ;;  %370 = vmatprep.mubr.f32.mxu0 %v3239_v0 }
  0x74   :  { %337 = vmatpush1.msra.mxu0 %v2553_v43  ;;  %1829 = vmatprep.subr.mxu1 %v3239_v0 }
  0x75   :  { %1835 = vmatprep.mubr.msk.f32.mxu1 %vm2363_vm0, %v3239_v0  ;;  %1830 = vmatpush3.msra.mxu1 %v2571_v47 }
  0x76   :  { %473 = vmatprep.subr.mxu0 %v2422_v1  ;;  %1831 = vmatprep.subr.mxu1 %v3239_v0 }
  0x77   :  { %1832 = vmatpush3.msra.mxu1 %v2577_v48 }
  0x78   :  { %1833 = vmatprep.subr.mxu1 %v3239_v0 }
  0x79   :  { %1834 = vmatpush3.msra.mxu1 %v2583_v49 }
  0x7a   :  { %1838 = vmatprep.subr.mxu1 %v3239_v0 }
 0x115   :  { %v205_v51 = vpop.f32.mrf.mxu0 }
 0x116   :  { %v280_v52 = vadd.f32 %v205_v51, %v136_v50 }
 0x117   :  { %v207_v55 = vpop.f32.mrf.mxu0 }
 0x118   :  { %v1598_v53 = vmul.f32 -1.442695, %v280_v52  ;;  %v287_v56 = vadd.f32 %v207_v55, %v137_v54  ;;  %v276_v57 = vpop.f32.mrf.mxu1  ;;  %v138_v52 = vld [vmem:[#allocation2 + $0x10] sm:$0xff] }
 0x119   :  { %v294_v50 = vadd.f32 %v2657_v63, %v276_v57 }
 0x11a   :  { %2095 = vpow2.f32 %v1598_v53  ;;  %v1599_v58 = vmul.f32 -1.442695, %v287_v56  ;;  %v1802_v59 = vpop.f32.mrf.mxu1 }
 0x11c   :  { %2097 = vpow2.f32 %v1599_v58 }
 0x127   :  { %v2096_v60 = vpop.eup %2095 }
 0x128   :  { %v284_v61 = vadd.f32 1.0, %v2096_v60 }
 0x129   :  { %v2098_v62 = vpop.eup %2097 }
 0x12a   :  { %2099 = vrcp.f32 %v284_v61  ;;  %v291_v0 = vadd.f32 1.0, %v2098_v62 }
 0x12c   :  { %2101 = vrcp.f32 %v291_v0  ;;  %v3260_v0 = vmov 0.0  }
 0x137   :  { %v2100_v51 = vpop.eup %2099 }
 0x138   :  { %v295_v53 = vmul.f32 %v2100_v51, %v294_v50 }
 0x139   :  { %v2102_v55 = vpop.eup %2101 }
 0x13a   :  { %v296_v54 = vadd.f32 %v295_v53, %v138_v52  ;;  %v298_v56 = vsub.f32 1.0, %v2102_v55  ;;  %v300_v60 = vmul.f32 %v2102_v55, %v2557_v44  ;;  %v303_v44 = vld [vmem:[#allocation2 + $0x18] sm:$0xff]  ;;  %v304_v53 = vld [vmem:[#allocation2 + $0x20] sm:$0xff] }
 0x13c   :  { %2103 = vtanh.f32 %v296_v54 }
 0x149   :  { %v2104_v58 = vpop.eup %2103 }
 0x14a   :  { %v299_v59 = vmul.f32 %v2104_v58, %v298_v56 }
 0x14c   :  { %v2661_v61 = vadd.f32 %v300_v60, %v299_v59 }
 0x14e   :  { %371 = vmatmul.mubr.f32.vlgmr.msra.gmra.mxu0 %v2661_v61  ;;  %1836 = vmatmul.mubr.f32.vlgmr.msra.gmra.mxu1 %v2661_v61 }
 0x14f   :  { %474 = vmatpush1.msra.mxu0 %v2424_v2  ;;  %1839 = vmatpush3.msra.mxu1 %v2458_v14 }
 0x150   :  { %475 = vmatprep.subr.mxu0 %v2426_v3  ;;  %1840 = vmatprep.subr.mxu1 %v3260_v0 }
 0x151   :  { %476 = vmatpush1.msra.mxu0 %v2429_v4  ;;  %1841 = vmatpush3.msra.mxu1 %v2464_v16 }
 0x152   :  { %477 = vmatprep.subr.mxu0 %v2432_v5  ;;  %1842 = vmatprep.subr.mxu1 %v3260_v0 }
 0x153   :  { %478 = vmatpush1.msra.mxu0 %v2435_v6  ;;  %1843 = vmatpush3.msra.mxu1 %v2470_v18 }
 0x154   :  { %479 = vmatprep.subr.mxu0 %v2438_v7  ;;  %1844 = vmatprep.subr.mxu1 %v3260_v0 }
 0x155   :  { %480 = vmatpush1.msra.mxu0 %v2441_v8  ;;  %1845 = vmatpush3.msra.mxu1 %v2480_v21 }
 0x156   :  { %481 = vmatprep.subr.mxu0 %v2444_v9  ;;  %1846 = vmatprep.subr.mxu1 %v3260_v0 }
 0x157   :  { %482 = vmatpush1.msra.mxu0 %v2447_v10  ;;  %1847 = vmatpush3.msra.mxu1 %v2490_v24 }
 0x158   :  { %483 = vmatprep.subr.mxu0 %v2450_v11  ;;  %1848 = vmatprep.subr.mxu1 %v3260_v0 }
 0x159   :  { %484 = vmatpush1.msra.mxu0 %v2453_v12  ;;  %1849 = vmatpush3.msra.mxu1 %v2500_v27 }
 0x15a   :  { %485 = vmatprep.subr.mxu0 %v2456_v13  ;;  %1850 = vmatprep.subr.mxu1 %v3260_v0 }
 0x15b   :  { %486 = vmatpush1.msra.mxu0 %v2461_v15  ;;  %1851 = vmatpush3.msra.mxu1 %v2510_v30 }
 0x15c   :  { %487 = vmatprep.subr.mxu0 %v2467_v17  ;;  %1852 = vmatprep.subr.mxu1 %v3260_v0 }
 0x15d   :  { %488 = vmatpush1.msra.mxu0 %v2473_v19  ;;  %1853 = vmatpush3.msra.mxu1 %v2520_v33 }
 0x15e   :  { %489 = vmatprep.subr.mxu0 %v2477_v20  ;;  %1854 = vmatprep.subr.mxu1 %v3260_v0 }
 0x15f   :  { %490 = vmatpush1.msra.mxu0 %v2483_v22  ;;  %1855 = vmatpush3.msra.mxu1 %v2530_v36 }
 0x160   :  { %491 = vmatprep.subr.mxu0 %v2487_v23  ;;  %1856 = vmatprep.subr.mxu1 %v3260_v0 }
 0x161   :  { %492 = vmatpush1.msra.mxu0 %v2493_v25  ;;  %1857 = vmatpush3.msra.mxu1 %v2540_v39 }
 0x162   :  { %493 = vmatprep.subr.mxu0 %v2497_v26  ;;  %1858 = vmatprep.subr.mxu1 %v3260_v0 }
 0x163   :  { %494 = vmatpush1.msra.mxu0 %v2503_v28  ;;  %1859 = vmatpush3.msra.mxu1 %v2550_v42 }
 0x164   :  { %495 = vmatprep.subr.mxu0 %v2507_v29  ;;  %1860 = vmatprep.subr.mxu1 %v3260_v0 }
 0x165   :  { %496 = vmatpush1.msra.mxu0 %v2513_v31  ;;  %1861 = vmatpush3.msra.mxu1 %v2560_v45 }
 0x166   :  { %497 = vmatprep.subr.mxu0 %v2517_v32  ;;  %1862 = vmatprep.subr.mxu1 %v3260_v0 }
 0x167   :  { %498 = vmatpush1.msra.mxu0 %v2523_v34  ;;  %1863 = vmatpush3.msra.mxu1 %v2566_v46 }
 0x168   :  { %499 = vmatprep.subr.mxu0 %v2527_v35  ;;  %1864 = vmatprep.subr.mxu1 %v3260_v0 }
 0x169   :  { %500 = vmatpush1.msra.mxu0 %v2533_v37  ;;  %1865 = vmatpush3.msra.mxu1 %v2571_v47 }
 0x16a   :  { %501 = vmatprep.subr.mxu0 %v2537_v38  ;;  %1866 = vmatprep.subr.mxu1 %v3260_v0 }
 0x16b   :  { %502 = vmatpush1.msra.mxu0 %v2543_v40  ;;  %1867 = vmatpush3.msra.mxu1 %v2577_v48 }
 0x16c   :  { %503 = vmatprep.subr.mxu0 %v2547_v41  ;;  %1868 = vmatprep.subr.mxu1 %v3260_v0  ;;  %v305_v41 = vld [vmem:[#allocation2 + $0x28] sm:$0xff] }
 0x16d   :  { %504 = vmatpush1.msra.mxu0 %v2553_v43  ;;  %537 = vmatprep.mubr.f32.mxu0 %v3260_v0 }
 0x16e   :  { %1869 = vmatpush3.msra.mxu1 %v2583_v49  ;;  %1870 = vmatprep.mubr.msk.f32.mxu1 %vm2363_vm0, %v3260_v0 }
 0x16f   :  { %640 = vmatprep.subr.mxu0 %v2422_v1  ;;  %1873 = vmatprep.subr.mxu1 %v3260_v0 }
 0x20e   :  { %v372_v57 = vpop.f32.mrf.mxu0  ;;  %v443_v62 = vpop.f32.mrf.mxu1 }
 0x20f   :  { %v447_v50 = vadd.f32 %v372_v57, %v303_v44  ;;  %v461_v1 = vadd.f32 %v2657_v63, %v443_v62 }
 0x210   :  { %v1837_v51 = vpop.f32.mrf.mxu1  ;;  %v374_v54 = vpop.f32.mrf.mxu0 }
 0x211   :  { %v1600_v52 = vmul.f32 -1.442695, %v447_v50  ;;  %v454_v55 = vadd.f32 %v374_v54, %v304_v53 }
 0x213   :  { %2105 = vpow2.f32 %v1600_v52  ;;  %v1601_v56 = vmul.f32 -1.442695, %v454_v55 }
 0x215   :  { %2107 = vpow2.f32 %v1601_v56 }
 0x220   :  { %v2106_v58 = vpop.eup %2105 }
 0x221   :  { %v451_v59 = vadd.f32 1.0, %v2106_v58 }
 0x222   :  { %v2108_v60 = vpop.eup %2107 }
 0x223   :  { %2109 = vrcp.f32 %v451_v59  ;;  %v458_v49 = vadd.f32 1.0, %v2108_v60  ;;  %v471_v60 = vld [vmem:[#allocation2 + $0x38] sm:$0xff] }
 0x225   :  { %2111 = vrcp.f32 %v458_v49  ;;  %v3265_v49 = vld [vmem:[#allocation18_spill] sm:$0xff] }
 0x230   :  { %v2110_v43 = vpop.eup %2109 }
 0x231   :  { %v462_v48 = vmul.f32 %v2110_v43, %v461_v1  ;;  %v3261_v1 = vld [vmem:[#allocation21_spill] sm:$0xff]  ;;  %v3263_v43 = vld [vmem:[#allocation20_spill] sm:$0xff] }
 0x232   :  { %v2112_v57 = vpop.eup %2111 }
 0x233   :  { %v463_v44 = vadd.f32 %v462_v48, %v305_v41  ;;  %v465_v50 = vsub.f32 1.0, %v2112_v57  ;;  %v467_v53 = vmul.f32 %v2112_v57, %v2661_v61  ;;  %v3262_v41 = vld [vmem:[#allocation19_spill] sm:$0xff]  ;;  %v3264_v48 = vld [vmem:[#allocation22_spill] sm:$0xff]  ;;  %v470_v61 = vld [vmem:[#allocation2 + $0x30] sm:$0xff] }
 0x235   :  { %2113 = vtanh.f32 %v463_v44 }
 0x242   :  { %v2114_v51 = vpop.eup %2113 }
 0x243   :  { %v466_v52 = vmul.f32 %v2114_v51, %v465_v50 }
 0x245   :  { %v2734_v54 = vadd.f32 %v467_v53, %v466_v52 }
 0x247   :  { %538 = vmatmul.mubr.f32.vlgmr.msra.gmra.mxu0 %v2734_v54  ;;  %1871 = vmatmul.mubr.f32.vlgmr.msra.gmra.mxu1 %v2734_v54 }
 0x248   :  { %641 = vmatpush1.msra.mxu0 %v2424_v2  ;;  %1874 = vmatpush3.msra.mxu1 %v2458_v14 }
 0x249   :  { %642 = vmatprep.subr.mxu0 %v2426_v3  ;;  %1875 = vmatprep.subr.mxu1 %v3260_v0 }
 0x24a   :  { %643 = vmatpush1.msra.mxu0 %v2429_v4  ;;  %1876 = vmatpush3.msra.mxu1 %v2464_v16 }
 0x24b   :  { %644 = vmatprep.subr.mxu0 %v2432_v5  ;;  %1877 = vmatprep.subr.mxu1 %v3260_v0 }
 0x24c   :  { %645 = vmatpush1.msra.mxu0 %v2435_v6  ;;  %1878 = vmatpush3.msra.mxu1 %v2470_v18 }
 0x24d   :  { %646 = vmatprep.subr.mxu0 %v2438_v7  ;;  %1879 = vmatprep.subr.mxu1 %v3260_v0 }
 0x24e   :  { %647 = vmatpush1.msra.mxu0 %v2441_v8  ;;  %1880 = vmatpush3.msra.mxu1 %v2480_v21 }
 0x24f   :  { %648 = vmatprep.subr.mxu0 %v2444_v9  ;;  %1881 = vmatprep.subr.mxu1 %v3260_v0 }
 0x250   :  { %649 = vmatpush1.msra.mxu0 %v2447_v10  ;;  %1882 = vmatpush3.msra.mxu1 %v2490_v24 }
 0x251   :  { %650 = vmatprep.subr.mxu0 %v2450_v11  ;;  %1883 = vmatprep.subr.mxu1 %v3260_v0 }
 0x252   :  { %651 = vmatpush1.msra.mxu0 %v2453_v12  ;;  %1884 = vmatpush3.msra.mxu1 %v2500_v27 }
 0x253   :  { %652 = vmatprep.subr.mxu0 %v2456_v13  ;;  %1885 = vmatprep.subr.mxu1 %v3260_v0 }
 0x254   :  { %653 = vmatpush1.msra.mxu0 %v2461_v15  ;;  %1886 = vmatpush3.msra.mxu1 %v2510_v30 }
 0x255   :  { %654 = vmatprep.subr.mxu0 %v2467_v17  ;;  %1887 = vmatprep.subr.mxu1 %v3260_v0 }
 0x256   :  { %655 = vmatpush1.msra.mxu0 %v2473_v19  ;;  %1888 = vmatpush3.msra.mxu1 %v2520_v33 }
 0x257   :  { %656 = vmatprep.subr.mxu0 %v2477_v20  ;;  %1889 = vmatprep.subr.mxu1 %v3260_v0 }
 0x258   :  { %657 = vmatpush1.msra.mxu0 %v2483_v22  ;;  %1890 = vmatpush3.msra.mxu1 %v2530_v36 }
 0x259   :  { %658 = vmatprep.subr.mxu0 %v2487_v23  ;;  %1891 = vmatprep.subr.mxu1 %v3260_v0 }
 0x25a   :  { %659 = vmatpush1.msra.mxu0 %v2493_v25  ;;  %1892 = vmatpush3.msra.mxu1 %v2540_v39 }
 0x25b   :  { %660 = vmatprep.subr.mxu0 %v2497_v26  ;;  %1893 = vmatprep.subr.mxu1 %v3260_v0 }
 0x25c   :  { %661 = vmatpush1.msra.mxu0 %v2503_v28  ;;  %1894 = vmatpush3.msra.mxu1 %v2550_v42 }
 0x25d   :  { %662 = vmatprep.subr.mxu0 %v2507_v29  ;;  %1895 = vmatprep.subr.mxu1 %v3260_v0 }
 0x25e   :  { %663 = vmatpush1.msra.mxu0 %v2513_v31  ;;  %1896 = vmatpush3.msra.mxu1 %v2560_v45 }
 0x25f   :  { %664 = vmatprep.subr.mxu0 %v2517_v32  ;;  %1897 = vmatprep.subr.mxu1 %v3260_v0 }
 0x260   :  { %665 = vmatpush1.msra.mxu0 %v2523_v34  ;;  %1898 = vmatpush3.msra.mxu1 %v2566_v46 }
 0x261   :  { %666 = vmatprep.subr.mxu0 %v2527_v35  ;;  %1899 = vmatprep.subr.mxu1 %v3260_v0 }
 0x262   :  { %667 = vmatpush1.msra.mxu0 %v2533_v37  ;;  %1900 = vmatpush3.msra.mxu1 %v2571_v47 }
 0x263   :  { %668 = vmatprep.subr.mxu0 %v2537_v38  ;;  %1901 = vmatprep.subr.mxu1 %v3260_v0 }
 0x264   :  { %669 = vmatpush1.msra.mxu0 %v2543_v40  ;;  %1902 = vmatpush3.msra.mxu1 %v3261_v1 }
 0x265   :  { %670 = vmatprep.subr.mxu0 %v3262_v41  ;;  %1903 = vmatprep.subr.mxu1 %v3260_v0  ;;  %v472_v41 = vld [vmem:[#allocation2 + $0x40] sm:$0xff] }
 0x266   :  { %671 = vmatpush1.msra.mxu0 %v3263_v43  ;;  %704 = vmatprep.mubr.f32.mxu0 %v3260_v0 }
 0x267   :  { %1904 = vmatpush3.msra.mxu1 %v3264_v48  ;;  %1905 = vmatprep.mubr.msk.f32.mxu1 %vm2363_vm0, %v3260_v0 }
 0x268   :  { %807 = vmatprep.subr.mxu0 %v3265_v49  ;;  %1908 = vmatprep.subr.mxu1 %v3260_v0 }
 0x307   :  { %v539_v62 = vpop.f32.mrf.mxu0  ;;  %v610_v55 = vpop.f32.mrf.mxu1 }
 0x308   :  { %v614_v56 = vadd.f32 %v539_v62, %v470_v61  ;;  %v628_v49 = vadd.f32 %v2657_v63, %v610_v55 }
 0x309   :  { %v1872_v58 = vpop.f32.mrf.mxu1  ;;  %v541_v44 = vpop.f32.mrf.mxu0 }
 0x30a   :  { %v1602_v59 = vmul.f32 -1.442695, %v614_v56  ;;  %v621_v57 = vadd.f32 %v541_v44, %v471_v60 }
 0x30c   :  { %2115 = vpow2.f32 %v1602_v59  ;;  %v1603_v50 = vmul.f32 -1.442695, %v621_v57 }
 0x30e   :  { %2117 = vpow2.f32 %v1603_v50 }
 0x319   :  { %v2116_v51 = vpop.eup %2115 }
 0x31a   :  { %v618_v52 = vadd.f32 1.0, %v2116_v51 }
 0x31b   :  { %v2118_v53 = vpop.eup %2117 }
 0x31c   :  { %2119 = vrcp.f32 %v618_v52  ;;  %v625_v48 = vadd.f32 1.0, %v2118_v53  ;;  %v638_v53 = vld [vmem:[#allocation2 + $0x50] sm:$0xff] }
 0x31e   :  { %2121 = vrcp.f32 %v625_v48  ;;  %v3270_v48 = vld [vmem:[#allocation18_spill] sm:$0xff] }
 0x329   :  { %v2120_v43 = vpop.eup %2119 }
 0x32a   :  { %v629_v1 = vmul.f32 %v2120_v43, %v628_v49  ;;  %v3269_v43 = vld [vmem:[#allocation22_spill] sm:$0xff]  ;;  %v637_v49 = vld [vmem:[#allocation2 + $0x48] sm:$0xff] }
 0x32b   :  { %v2122_v62 = vpop.eup %2121 }
 0x32c   :  { %v630_v61 = vadd.f32 %v629_v1, %v472_v41  ;;  %v632_v56 = vsub.f32 1.0, %v2122_v62  ;;  %v634_v60 = vmul.f32 %v2122_v62, %v2734_v54  ;;  %v3266_v54 = vld [vmem:[#allocation21_spill] sm:$0xff]  ;;  %v3267_v1 = vld [vmem:[#allocation19_spill] sm:$0xff]  ;;  %v3268_v41 = vld [vmem:[#allocation20_spill] sm:$0xff] }
 0x32e   :  { %2123 = vtanh.f32 %v630_v61 }
 0x33b   :  { %v2124_v58 = vpop.eup %2123 }
 0x33c   :  { %v633_v59 = vmul.f32 %v2124_v58, %v632_v56 }
 0x33e   :  { %v2807_v44 = vadd.f32 %v634_v60, %v633_v59 }
 0x340   :  { %705 = vmatmul.mubr.f32.vlgmr.msra.gmra.mxu0 %v2807_v44  ;;  %1906 = vmatmul.mubr.f32.vlgmr.msra.gmra.mxu1 %v2807_v44 }
 0x341   :  { %808 = vmatpush1.msra.mxu0 %v2424_v2  ;;  %1909 = vmatpush3.msra.mxu1 %v2458_v14 }
 0x342   :  { %809 = vmatprep.subr.mxu0 %v2426_v3  ;;  %1910 = vmatprep.subr.mxu1 %v3260_v0 }
 0x343   :  { %810 = vmatpush1.msra.mxu0 %v2429_v4  ;;  %1911 = vmatpush3.msra.mxu1 %v2464_v16 }
 0x344   :  { %811 = vmatprep.subr.mxu0 %v2432_v5  ;;  %1912 = vmatprep.subr.mxu1 %v3260_v0 }
 0x345   :  { %812 = vmatpush1.msra.mxu0 %v2435_v6  ;;  %1913 = vmatpush3.msra.mxu1 %v2470_v18 }
 0x346   :  { %813 = vmatprep.subr.mxu0 %v2438_v7  ;;  %1914 = vmatprep.subr.mxu1 %v3260_v0 }
 0x347   :  { %814 = vmatpush1.msra.mxu0 %v2441_v8  ;;  %1915 = vmatpush3.msra.mxu1 %v2480_v21 }
 0x348   :  { %815 = vmatprep.subr.mxu0 %v2444_v9  ;;  %1916 = vmatprep.subr.mxu1 %v3260_v0 }
 0x349   :  { %816 = vmatpush1.msra.mxu0 %v2447_v10  ;;  %1917 = vmatpush3.msra.mxu1 %v2490_v24 }
 0x34a   :  { %817 = vmatprep.subr.mxu0 %v2450_v11  ;;  %1918 = vmatprep.subr.mxu1 %v3260_v0 }
 0x34b   :  { %818 = vmatpush1.msra.mxu0 %v2453_v12  ;;  %1919 = vmatpush3.msra.mxu1 %v2500_v27 }
 0x34c   :  { %819 = vmatprep.subr.mxu0 %v2456_v13  ;;  %1920 = vmatprep.subr.mxu1 %v3260_v0 }
 0x34d   :  { %820 = vmatpush1.msra.mxu0 %v2461_v15  ;;  %1921 = vmatpush3.msra.mxu1 %v2510_v30 }
 0x34e   :  { %821 = vmatprep.subr.mxu0 %v2467_v17  ;;  %1922 = vmatprep.subr.mxu1 %v3260_v0 }
 0x34f   :  { %822 = vmatpush1.msra.mxu0 %v2473_v19  ;;  %1923 = vmatpush3.msra.mxu1 %v2520_v33 }
 0x350   :  { %823 = vmatprep.subr.mxu0 %v2477_v20  ;;  %1924 = vmatprep.subr.mxu1 %v3260_v0 }
 0x351   :  { %824 = vmatpush1.msra.mxu0 %v2483_v22  ;;  %1925 = vmatpush3.msra.mxu1 %v2530_v36 }
 0x352   :  { %825 = vmatprep.subr.mxu0 %v2487_v23  ;;  %1926 = vmatprep.subr.mxu1 %v3260_v0 }
 0x353   :  { %826 = vmatpush1.msra.mxu0 %v2493_v25  ;;  %1927 = vmatpush3.msra.mxu1 %v2540_v39 }
 0x354   :  { %827 = vmatprep.subr.mxu0 %v2497_v26  ;;  %1928 = vmatprep.subr.mxu1 %v3260_v0 }
 0x355   :  { %828 = vmatpush1.msra.mxu0 %v2503_v28  ;;  %1929 = vmatpush3.msra.mxu1 %v2550_v42 }
 0x356   :  { %829 = vmatprep.subr.mxu0 %v2507_v29  ;;  %1930 = vmatprep.subr.mxu1 %v3260_v0 }
 0x357   :  { %830 = vmatpush1.msra.mxu0 %v2513_v31  ;;  %1931 = vmatpush3.msra.mxu1 %v2560_v45 }
 0x358   :  { %831 = vmatprep.subr.mxu0 %v2517_v32  ;;  %1932 = vmatprep.subr.mxu1 %v3260_v0 }
 0x359   :  { %832 = vmatpush1.msra.mxu0 %v2523_v34  ;;  %1933 = vmatpush3.msra.mxu1 %v2566_v46 }
 0x35a   :  { %833 = vmatprep.subr.mxu0 %v2527_v35  ;;  %1934 = vmatprep.subr.mxu1 %v3260_v0 }
 0x35b   :  { %834 = vmatpush1.msra.mxu0 %v2533_v37  ;;  %1935 = vmatpush3.msra.mxu1 %v2571_v47 }
 0x35c   :  { %835 = vmatprep.subr.mxu0 %v2537_v38  ;;  %1936 = vmatprep.subr.mxu1 %v3260_v0 }
 0x35d   :  { %836 = vmatpush1.msra.mxu0 %v2543_v40  ;;  %1937 = vmatpush3.msra.mxu1 %v3266_v54 }
 0x35e   :  { %837 = vmatprep.subr.mxu0 %v3267_v1  ;;  %1938 = vmatprep.subr.mxu1 %v3260_v0  ;;  %v639_v1 = vld [vmem:[#allocation2 + $0x58] sm:$0xff] }
 0x35f   :  { %838 = vmatpush1.msra.mxu0 %v3268_v41  ;;  %871 = vmatprep.mubr.f32.mxu0 %v3260_v0 }
 0x360   :  { %1939 = vmatpush3.msra.mxu1 %v3269_v43  ;;  %1940 = vmatprep.mubr.msk.f32.mxu1 %vm2363_vm0, %v3260_v0 }
 0x361   :  { %974 = vmatprep.subr.mxu0 %v3270_v48  ;;  %1943 = vmatprep.subr.mxu1 %v3260_v0 }
 0x400   :  { %v706_v55 = vpop.f32.mrf.mxu0  ;;  %v777_v57 = vpop.f32.mrf.mxu1 }
 0x401   :  { %v781_v50 = vadd.f32 %v706_v55, %v637_v49  ;;  %v795_v48 = vadd.f32 %v2657_v63, %v777_v57  ;;  %v3019_v57 = vld [vmem:[#allocation7 + $0xd8] sm:$0xff] }
 0x402   :  { %v1907_v51 = vpop.f32.mrf.mxu1  ;;  %v708_v61 = vpop.f32.mrf.mxu0 }
 0x403   :  { %v1604_v52 = vmul.f32 -1.442695, %v781_v50  ;;  %v788_v62 = vadd.f32 %v708_v61, %v638_v53 }
 0x405   :  { %2125 = vpow2.f32 %v1604_v52  ;;  %v1605_v56 = vmul.f32 -1.442695, %v788_v62  ;;  %v3022_v62 = vld [vmem:[#allocation7 + $0xe8] sm:$0xff] }
 0x407   :  { %2127 = vpow2.f32 %v1605_v56  ;;  %v3025_v56 = vld [vmem:[#allocation7 + $0xc8] sm:$0xff] }
 0x412   :  { %v2126_v58 = vpop.eup %2125 }
 0x413   :  { %v785_v59 = vadd.f32 1.0, %v2126_v58  ;;  %v3029_v58 = vld [vmem:[#allocation7 + $0xc0] sm:$0xff] }
 0x414   :  { %v2128_v60 = vpop.eup %2127 }
 0x415   :  { %2129 = vrcp.f32 %v785_v59  ;;  %v792_v43 = vadd.f32 1.0, %v2128_v60  ;;  %v3032_v59 = vld [vmem:[#allocation7 + $0xd0] sm:$0xff] }
 0x416   :  { %v3035_v60 = vld [vmem:[#allocation7 + $0xb0] sm:$0xff] }
 0x417   :  { %2131 = vrcp.f32 %v792_v43  ;;  %v3015_v43 = vld [vmem:[#allocation7 + $0xe0] sm:$0xff] }
 0x422   :  { %v2130_v41 = vpop.eup %2129 }
 0x423   :  { %v796_v54 = vmul.f32 %v2130_v41, %v795_v48  ;;  %v3012_v41 = vld [vmem:[#allocation7 + $0x100] sm:$0xff]  ;;  %v3039_v48 = vld [vmem:[#allocation7 + $0xa8] sm:$0xff] }
 0x424   :  { %v2132_v55 = vpop.eup %2131 }
 0x425   :  { %v797_v49 = vadd.f32 %v796_v54, %v639_v1  ;;  %v799_v50 = vsub.f32 1.0, %v2132_v55  ;;  %v801_v53 = vmul.f32 %v2132_v55, %v2807_v44  ;;  %v3002_v44 = vld [vmem:[#allocation7 + $0x118] sm:$0xff]  ;;  %v3009_v1 = vld [vmem:[#allocation7 + $0xf0] sm:$0xff] }
 0x426   :  { %v3005_v54 = vld [vmem:[#allocation7 + $0xf8] sm:$0xff] }
 0x427   :  { %2133 = vtanh.f32 %v797_v49  ;;  %v3042_v49 = vld [vmem:[#allocation7 + $0xb8] sm:$0xff] }
 0x428   :  { %v3045_v55 = vld [vmem:[#allocation7 + $0x98] sm:$0xff] }
 0x434   :  { %v2134_v51 = vpop.eup %2133 }
 0x435   :  { %v800_v52 = vmul.f32 %v2134_v51, %v799_v50  ;;  %v3049_v50 = vld [vmem:[#allocation7 + $0x90] sm:$0xff]  ;;  %v3052_v51 = vld [vmem:[#allocation7 + $0xa0] sm:$0xff] }
 0x437   :  { %v2880_v61 = vadd.f32 %v801_v53, %v800_v52  ;;  %v3055_v52 = vld [vmem:[#allocation7 + $0x80] sm:$0xff]  ;;  %v3059_v53 = vld [vmem:[#allocation7 + $0x78] sm:$0xff] }
 0x439   :  { %872 = vmatmul.mubr.f32.vlgmr.msra.gmra.mxu0 %v2880_v61  ;;  %1941 = vmatmul.mubr.f32.vlgmr.msra.gmra.mxu1 %v2880_v61 }
 0x43a   :  { %975 = vmatpush1.msra.mxu0 %v2424_v2  ;;  %1944 = vmatpush3.msra.mxu1 %v2458_v14  ;;  %v3271_v2 = vld [vmem:[#allocation21_spill] sm:$0xff] }
 0x43b   :  { %976 = vmatprep.subr.mxu0 %v2426_v3  ;;  %1945 = vmatprep.subr.mxu1 %v3260_v0  ;;  %v3272_v3 = vld [vmem:[#allocation19_spill] sm:$0xff] }
 0x43c   :  { %977 = vmatpush1.msra.mxu0 %v2429_v4  ;;  %1946 = vmatpush3.msra.mxu1 %v2464_v16  ;;  %v3273_v4 = vld [vmem:[#allocation20_spill] sm:$0xff] }
 0x43d   :  { %978 = vmatprep.subr.mxu0 %v2432_v5  ;;  %1947 = vmatprep.subr.mxu1 %v3260_v0  ;;  %v3274_v5 = vld [vmem:[#allocation22_spill] sm:$0xff] }
 0x43e   :  { %979 = vmatpush1.msra.mxu0 %v2435_v6  ;;  %1948 = vmatpush3.msra.mxu1 %v2470_v18  ;;  %v2949_v6 = vld [vmem:[#allocation7 + $0x170] sm:$0xff] }
 0x43f   :  { %980 = vmatprep.subr.mxu0 %v2438_v7  ;;  %1949 = vmatprep.subr.mxu1 %v3260_v0  ;;  %v804_v7 = vld [vmem:[#allocation2 + $0x60] sm:$0xff] }
 0x440   :  { %981 = vmatpush1.msra.mxu0 %v2441_v8  ;;  %1950 = vmatpush3.msra.mxu1 %v2480_v21 }
 0x441   :  { %982 = vmatprep.subr.mxu0 %v2444_v9  ;;  %1951 = vmatprep.subr.mxu1 %v3260_v0 }
 0x442   :  { %983 = vmatpush1.msra.mxu0 %v2447_v10  ;;  %1952 = vmatpush3.msra.mxu1 %v2490_v24 }
 0x443   :  { %984 = vmatprep.subr.mxu0 %v2450_v11  ;;  %1953 = vmatprep.subr.mxu1 %v3260_v0 }
 0x444   :  { %985 = vmatpush1.msra.mxu0 %v2453_v12  ;;  %1954 = vmatpush3.msra.mxu1 %v2500_v27 }
 0x445   :  { %986 = vmatprep.subr.mxu0 %v2456_v13  ;;  %1955 = vmatprep.subr.mxu1 %v3260_v0  ;;  %v805_v13 = vld [vmem:[#allocation2 + $0x68] sm:$0xff] }
 0x446   :  { %987 = vmatpush1.msra.mxu0 %v2461_v15  ;;  %1956 = vmatpush3.msra.mxu1 %v2510_v30 }
 0x447   :  { %988 = vmatprep.subr.mxu0 %v2467_v17  ;;  %1957 = vmatprep.subr.mxu1 %v3260_v0 }
 0x448   :  { %989 = vmatpush1.msra.mxu0 %v2473_v19  ;;  %1958 = vmatpush3.msra.mxu1 %v2520_v33  ;;  %v2962_v33 = vld [vmem:[#allocation7 + $0x178] sm:$0xff] }
 0x449   :  { %990 = vmatprep.subr.mxu0 %v2477_v20  ;;  %1959 = vmatprep.subr.mxu1 %v3260_v0 }
 0x44a   :  { %991 = vmatpush1.msra.mxu0 %v2483_v22  ;;  %1960 = vmatpush3.msra.mxu1 %v2530_v36  ;;  %v2972_v36 = vld [vmem:[#allocation7 + $0x160] sm:$0xff] }
 0x44b   :  { %992 = vmatprep.subr.mxu0 %v2487_v23  ;;  %1961 = vmatprep.subr.mxu1 %v3260_v0  ;;  %v806_v23 = vld [vmem:[#allocation2 + $0x70] sm:$0xff] }
 0x44c   :  { %993 = vmatpush1.msra.mxu0 %v2493_v25  ;;  %1962 = vmatpush3.msra.mxu1 %v2540_v39  ;;  %v2982_v39 = vld [vmem:[#allocation7 + $0x148] sm:$0xff] }
 0x44d   :  { %994 = vmatprep.subr.mxu0 %v2497_v26  ;;  %1963 = vmatprep.subr.mxu1 %v3260_v0 }
 0x44e   :  { %995 = vmatpush1.msra.mxu0 %v2503_v28  ;;  %1964 = vmatpush3.msra.mxu1 %v2550_v42  ;;  %v2989_v42 = vld [vmem:[#allocation7 + $0x120] sm:$0xff] }
 0x44f   :  { %996 = vmatprep.subr.mxu0 %v2507_v29  ;;  %1965 = vmatprep.subr.mxu1 %v3260_v0 }
 0x450   :  { %997 = vmatpush1.msra.mxu0 %v2513_v31  ;;  %1966 = vmatpush3.msra.mxu1 %v2560_v45  ;;  %v2992_v45 = vld [vmem:[#allocation7 + $0x130] sm:$0xff] }
 0x451   :  { %998 = vmatprep.subr.mxu0 %v2517_v32  ;;  %1967 = vmatprep.subr.mxu1 %v3260_v0  ;;  %v2959_v32 = vld [vmem:[#allocation7 + $0x168] sm:$0xff] }
 0x452   :  { %999 = vmatpush1.msra.mxu0 %v2523_v34  ;;  %1968 = vmatpush3.msra.mxu1 %v2566_v46  ;;  %v2965_v34 = vld [vmem:[#allocation7 + $0x158] sm:$0xff]  ;;  %v2995_v46 = vld [vmem:[#allocation7 + $0x110] sm:$0xff] }
 0x453   :  { %1000 = vmatprep.subr.mxu0 %v2527_v35  ;;  %1969 = vmatprep.subr.mxu1 %v3260_v0  ;;  %v2969_v35 = vld [vmem:[#allocation7 + $0x150] sm:$0xff] }
 0x454   :  { %1001 = vmatpush1.msra.mxu0 %v2533_v37  ;;  %1970 = vmatpush3.msra.mxu1 %v2571_v47  ;;  %v2975_v37 = vld [vmem:[#allocation7 + $0x140] sm:$0xff]  ;;  %v2999_v47 = vld [vmem:[#allocation7 + $0x108] sm:$0xff] }
 0x455   :  { %1002 = vmatprep.subr.mxu0 %v2537_v38  ;;  %1971 = vmatprep.subr.mxu1 %v3260_v0  ;;  %v2979_v38 = vld [vmem:[#allocation7 + $0x138] sm:$0xff] }
 0x456   :  { %1003 = vmatpush1.msra.mxu0 %v2543_v40  ;;  %1972 = vmatpush3.msra.mxu1 %v3271_v2  ;;  %v2985_v40 = vld [vmem:[#allocation7 + $0x128] sm:$0xff] }
 0x457   :  { %1004 = vmatprep.subr.mxu0 %v3272_v3  ;;  %1973 = vmatprep.subr.mxu1 %v3260_v0  ;;  %v3065_v2 = vld [vmem:[#allocation7 + $0x68] sm:$0xff]  ;;  %v3069_v3 = vld [vmem:[#allocation7 + $0x60] sm:$0xff] }
 0x458   :  { %1005 = vmatpush1.msra.mxu0 %v3273_v4  ;;  %1038 = vmatprep.mubr.f32.mxu0 %v3260_v0  ;;  %v3072_v4 = vld [vmem:[#allocation7 + $0x70] sm:$0xff] }
 0x459   :  { %1974 = vmatpush3.msra.mxu1 %v3274_v5  ;;  %1975 = vmatprep.mubr.msk.f32.mxu1 %vm2363_vm0, %v3260_v0  ;;  %v3075_v5 = vld [vmem:[#allocation7 + $0x50] sm:$0xff] }
 0x45a   :  { %1141 = vmatprep.subr.mxu0 %v2949_v6  ;;  %1978 = vmatprep.subr.mxu1 %v3260_v0 }
 0x4f9   :  { %v873_v8 = vpop.f32.mrf.mxu0  ;;  %v944_v9 = vpop.f32.mrf.mxu1 }
 0x4fa   :  { %v948_v10 = vadd.f32 %v873_v8, %v804_v7  ;;  %v962_v21 = vadd.f32 %v2657_v63, %v944_v9  ;;  %v3079_v7 = vld [vmem:[#allocation7 + $0x48] sm:$0xff]  ;;  %v3082_v8 = vld [vmem:[#allocation7 + $0x58] sm:$0xff] }
 0x4fb   :  { %v1942_v11 = vpop.f32.mrf.mxu1  ;;  %v875_v14 = vpop.f32.mrf.mxu0  ;;  %v3085_v9 = vld [vmem:[#allocation7 + $0x38] sm:$0xff] }
 0x4fc   :  { %v1606_v12 = vmul.f32 -1.442695, %v948_v10  ;;  %v955_v15 = vadd.f32 %v875_v14, %v805_v13  ;;  %v3089_v10 = vld [vmem:[#allocation7 + $0x30] sm:$0xff]  ;;  %v3092_v11 = vld [vmem:[#allocation7 + $0x40] sm:$0xff]  ;;  %v3099_v13 = vld [vmem:[#allocation7 + $0x18] sm:$0xff] }
 0x4fd   :  { %v3102_v14 = vld [vmem:[#allocation7 + $0x28] sm:$0xff] }
 0x4fe   :  { %2135 = vpow2.f32 %v1606_v12  ;;  %v1607_v16 = vmul.f32 -1.442695, %v955_v15  ;;  %v3095_v12 = vld [vmem:[#allocation7 + $0x20] sm:$0xff]  ;;  %3275 = vst [vmem:[#allocation18_spill] sm:$0xff] %v3102_v14  ;;  %v3105_v15 = vld [vmem:[#allocation7 + $0x8] sm:$0xff] }
 0x4ff   :  { %3276 = vst [vmem:[#allocation21_spill] sm:$0xff] %v3105_v15 }
 0x500   :  { %2137 = vpow2.f32 %v1607_v16  ;;  %v3109_v16 = vld [vmem:[#allocation7] sm:$0xff] }
 0x501   :  { %3277 = vst [vmem:[#allocation19_spill] sm:$0xff] %v3109_v16 }
 0x50b   :  { %v2136_v17 = vpop.eup %2135 }
 0x50c   :  { %v952_v18 = vadd.f32 1.0, %v2136_v17  ;;  %v3113_v17 = vld [vmem:[#allocation7 + $0x10] sm:$0xff] }
 0x50d   :  { %v2138_v19 = vpop.eup %2137  ;;  %3278 = vst [vmem:[#allocation20_spill] sm:$0xff] %v3113_v17 }
 0x50e   :  { %2139 = vrcp.f32 %v952_v18  ;;  %v959_v20 = vadd.f32 1.0, %v2138_v19  ;;  %v971_v18 = vld [vmem:[#allocation2 + $0x78] sm:$0xff] }
 0x510   :  { %2141 = vrcp.f32 %v959_v20 }
 0x51b   :  { %v2140_v22 = vpop.eup %2139 }
 0x51c   :  { %v963_v24 = vmul.f32 %v2140_v22, %v962_v21 }
 0x51d   :  { %v2142_v26 = vpop.eup %2141 }
 0x51e   :  { %v964_v25 = vadd.f32 %v963_v24, %v806_v23  ;;  %v966_v27 = vsub.f32 1.0, %v2142_v26  ;;  %v968_v30 = vmul.f32 %v2142_v26, %v2880_v61  ;;  %v3062_v61 = vld [vmem:[#allocation7 + $0x88] sm:$0xff]  ;;  %v972_v24 = vld [vmem:[#allocation2 + $0x80] sm:$0xff] }
 0x520   :  { %2143 = vtanh.f32 %v964_v25 }
 0x52d   :  { %v2144_v28 = vpop.eup %2143 }
 0x52e   :  { %v967_v29 = vmul.f32 %v2144_v28, %v966_v27 }
 0x530   :  { %v2955_v31 = vadd.f32 %v968_v30, %v967_v29 }
 0x532   :  { %1039 = vmatmul.mubr.f32.vlgmr.msra.gmra.mxu0 %v2955_v31  ;;  %1976 = vmatmul.mubr.f32.vlgmr.msra.gmra.mxu1 %v2955_v31 }
 0x533   :  { %1142 = vmatpush1.msra.mxu0 %v2959_v32  ;;  %1979 = vmatpush3.msra.mxu1 %v2962_v33 }
 0x534   :  { %1143 = vmatprep.subr.mxu0 %v2965_v34  ;;  %1980 = vmatprep.subr.mxu1 %v3260_v0 }
 0x535   :  { %1144 = vmatpush1.msra.mxu0 %v2969_v35  ;;  %1981 = vmatpush3.msra.mxu1 %v2972_v36 }
 0x536   :  { %1145 = vmatprep.subr.mxu0 %v2975_v37  ;;  %1982 = vmatprep.subr.mxu1 %v3260_v0 }
 0x537   :  { %1146 = vmatpush1.msra.mxu0 %v2979_v38  ;;  %1983 = vmatpush3.msra.mxu1 %v2982_v39 }
 0x538   :  { %1147 = vmatprep.subr.mxu0 %v2985_v40  ;;  %1984 = vmatprep.subr.mxu1 %v3260_v0 }
 0x539   :  { %1148 = vmatpush1.msra.mxu0 %v2989_v42  ;;  %1985 = vmatpush3.msra.mxu1 %v2992_v45 }
 0x53a   :  { %1149 = vmatprep.subr.mxu0 %v2995_v46  ;;  %1986 = vmatprep.subr.mxu1 %v3260_v0 }
 0x53b   :  { %1150 = vmatpush1.msra.mxu0 %v2999_v47  ;;  %1987 = vmatpush3.msra.mxu1 %v3002_v44 }
 0x53c   :  { %1151 = vmatprep.subr.mxu0 %v3005_v54  ;;  %1988 = vmatprep.subr.mxu1 %v3260_v0 }
 0x53d   :  { %1152 = vmatpush1.msra.mxu0 %v3009_v1  ;;  %1989 = vmatpush3.msra.mxu1 %v3012_v41 }
 0x53e   :  { %1153 = vmatprep.subr.mxu0 %v3015_v43  ;;  %1990 = vmatprep.subr.mxu1 %v3260_v0 }
 0x53f   :  { %1154 = vmatpush1.msra.mxu0 %v3019_v57  ;;  %1991 = vmatpush3.msra.mxu1 %v3022_v62 }
 0x540   :  { %1155 = vmatprep.subr.mxu0 %v3025_v56  ;;  %1992 = vmatprep.subr.mxu1 %v3260_v0 }
 0x541   :  { %1156 = vmatpush1.msra.mxu0 %v3029_v58  ;;  %1993 = vmatpush3.msra.mxu1 %v3032_v59 }
 0x542   :  { %1157 = vmatprep.subr.mxu0 %v3035_v60  ;;  %1994 = vmatprep.subr.mxu1 %v3260_v0 }
 0x543   :  { %1158 = vmatpush1.msra.mxu0 %v3039_v48  ;;  %1995 = vmatpush3.msra.mxu1 %v3042_v49 }
 0x544   :  { %1159 = vmatprep.subr.mxu0 %v3045_v55  ;;  %1996 = vmatprep.subr.mxu1 %v3260_v0 }
 0x545   :  { %1160 = vmatpush1.msra.mxu0 %v3049_v50  ;;  %1997 = vmatpush3.msra.mxu1 %v3052_v51 }
 0x546   :  { %1161 = vmatprep.subr.mxu0 %v3055_v52  ;;  %1998 = vmatprep.subr.mxu1 %v3260_v0 }
 0x547   :  { %1162 = vmatpush1.msra.mxu0 %v3059_v53  ;;  %1999 = vmatpush3.msra.mxu1 %v3062_v61 }
 0x548   :  { %1163 = vmatprep.subr.mxu0 %v3065_v2  ;;  %2000 = vmatprep.subr.mxu1 %v3260_v0 }
 0x549   :  { %1164 = vmatpush1.msra.mxu0 %v3069_v3  ;;  %2001 = vmatpush3.msra.mxu1 %v3072_v4 }
 0x54a   :  { %1165 = vmatprep.subr.mxu0 %v3075_v5  ;;  %2002 = vmatprep.subr.mxu1 %v3260_v0 }
 0x54b   :  { %1166 = vmatpush1.msra.mxu0 %v3079_v7  ;;  %2003 = vmatpush3.msra.mxu1 %v3082_v8 }
 0x54c   :  { %1167 = vmatprep.subr.mxu0 %v3085_v9  ;;  %2004 = vmatprep.subr.mxu1 %v3260_v0 }
 0x54d   :  { %1168 = vmatpush1.msra.mxu0 %v3089_v10  ;;  %2005 = vmatpush3.msra.mxu1 %v3092_v11 }
 0x54e   :  { %1169 = vmatprep.subr.mxu0 %v3095_v12  ;;  %2006 = vmatprep.subr.mxu1 %v3260_v0 }
 0x54f   :  { %1170 = vmatpush1.msra.mxu0 %v3099_v13  ;;  %2007 = vmatpush3.msra.mxu1 %v3102_v14 }
 0x550   :  { %1171 = vmatprep.subr.mxu0 %v3105_v15  ;;  %2008 = vmatprep.subr.mxu1 %v3260_v0  ;;  %v973_v15 = vld [vmem:[#allocation2 + $0x88] sm:$0xff] }
 0x551   :  { %1172 = vmatpush1.msra.mxu0 %v3109_v16  ;;  %1205 = vmatprep.mubr.f32.mxu0 %v3260_v0 }
 0x552   :  { %2009 = vmatpush3.msra.mxu1 %v3113_v17  ;;  %2010 = vmatprep.mubr.msk.f32.mxu1 %vm2363_vm0, %v3260_v0 }
 0x553   :  { %1308 = vmatprep.subr.mxu0 %v2949_v6  ;;  %2013 = vmatprep.subr.mxu1 %v3260_v0 }
 0x5f2   :  { %v1040_v19 = vpop.f32.mrf.mxu0  ;;  %v1111_v20 = vpop.f32.mrf.mxu1 }
 0x5f3   :  { %v1115_v21 = vadd.f32 %v1040_v19, %v971_v18  ;;  %v1129_v6 = vadd.f32 %v2657_v63, %v1111_v20  ;;  %v3279_v63 = vld [vmem:[#allocation18_spill] sm:$0xff] }
 0x5f4   :  { %v1977_v22 = vpop.f32.mrf.mxu1  ;;  %v1042_v25 = vpop.f32.mrf.mxu0 }
 0x5f5   :  { %v1608_v23 = vmul.f32 -1.442695, %v1115_v21  ;;  %v1122_v26 = vadd.f32 %v1042_v25, %v972_v24 }
 0x5f7   :  { %2145 = vpow2.f32 %v1608_v23  ;;  %v1609_v27 = vmul.f32 -1.442695, %v1122_v26 }
 0x5f9   :  { %2147 = vpow2.f32 %v1609_v27 }
 0x604   :  { %v2146_v28 = vpop.eup %2145 }
 0x605   :  { %v1119_v29 = vadd.f32 1.0, %v2146_v28  ;;  %v1306_v28 = vld [vmem:[#allocation2 + $0xb0] sm:$0xff] }
 0x606   :  { %v2148_v30 = vpop.eup %2147 }
 0x607   :  { %2149 = vrcp.f32 %v1119_v29  ;;  %v1126_v17 = vadd.f32 1.0, %v2148_v30 }
 0x609   :  { %2151 = vrcp.f32 %v1126_v17 }
 0x614   :  { %v2150_v16 = vpop.eup %2149 }
 0x615   :  { %v1130_v14 = vmul.f32 %v2150_v16, %v1129_v6 }
 0x616   :  { %v2152_v19 = vpop.eup %2151 }
 0x617   :  { %v1131_v18 = vadd.f32 %v1130_v14, %v973_v15  ;;  %v1133_v21 = vsub.f32 1.0, %v2152_v19  ;;  %v1135_v24 = vmul.f32 %v2152_v19, %v2955_v31  ;;  %v3280_v31 = vld [vmem:[#allocation21_spill] sm:$0xff]  ;;  %v1472_v14 = vld [vmem:[#allocation8] sm:$0xff] }
 0x618   :  { %v1305_v15 = vld [vmem:[#allocation2 + $0xa8] sm:$0xff] }
 0x619   :  { %2153 = vtanh.f32 %v1131_v18 }
 0x626   :  { %v2154_v22 = vpop.eup %2153 }
 0x627   :  { %v1134_v23 = vmul.f32 %v2154_v22, %v1133_v21 }
 0x629   :  { %v3122_v25 = vadd.f32 %v1135_v24, %v1134_v23  ;;  %v1307_v24 = vld [vmem:[#allocation2 + $0xb8] sm:$0xff] }
 0x62b   :  { %1206 = vmatmul.mubr.f32.vlgmr.msra.gmra.mxu0 %v3122_v25  ;;  %2011 = vmatmul.mubr.f32.vlgmr.msra.gmra.mxu1 %v3122_v25 }
 0x62c   :  { %1309 = vmatpush1.msra.mxu0 %v2959_v32  ;;  %2014 = vmatpush3.msra.mxu1 %v2962_v33  ;;  %v3281_v32 = vld [vmem:[#allocation19_spill] sm:$0xff]  ;;  %v3282_v33 = vld [vmem:[#allocation20_spill] sm:$0xff] }
 0x62d   :  { %1310 = vmatprep.subr.mxu0 %v2965_v34  ;;  %2015 = vmatprep.subr.mxu1 %v3260_v0  ;;  %v1138_v34 = vld [vmem:[#allocation2 + $0x90] sm:$0xff] }
 0x62e   :  { %1311 = vmatpush1.msra.mxu0 %v2969_v35  ;;  %2016 = vmatpush3.msra.mxu1 %v2972_v36 }
 0x62f   :  { %1312 = vmatprep.subr.mxu0 %v2975_v37  ;;  %2017 = vmatprep.subr.mxu1 %v3260_v0 }
 0x630   :  { %1313 = vmatpush1.msra.mxu0 %v2979_v38  ;;  %2018 = vmatpush3.msra.mxu1 %v2982_v39 }
 0x631   :  { %1314 = vmatprep.subr.mxu0 %v2985_v40  ;;  %2019 = vmatprep.subr.mxu1 %v3260_v0  ;;  %v1139_v40 = vld [vmem:[#allocation2 + $0x98] sm:$0xff] }
 0x632   :  { %1315 = vmatpush1.msra.mxu0 %v2989_v42  ;;  %2020 = vmatpush3.msra.mxu1 %v2992_v45 }
 0x633   :  { %1316 = vmatprep.subr.mxu0 %v2995_v46  ;;  %2021 = vmatprep.subr.mxu1 %v3260_v0 }
 0x634   :  { %1317 = vmatpush1.msra.mxu0 %v2999_v47  ;;  %2022 = vmatpush3.msra.mxu1 %v3002_v44 }
 0x635   :  { %1318 = vmatprep.subr.mxu0 %v3005_v54  ;;  %2023 = vmatprep.subr.mxu1 %v3260_v0 }
 0x636   :  { %1319 = vmatpush1.msra.mxu0 %v3009_v1  ;;  %2024 = vmatpush3.msra.mxu1 %v3012_v41  ;;  %v3195_v41 = vld [vmem:[%s3234_s3] ss:$0 sm:$0xff]  ;;  %s2364_s3 = smov [#allocation11]  }
 0x637   :  { %1320 = vmatprep.subr.mxu0 %v3015_v43  ;;  %2025 = vmatprep.subr.mxu1 %v3260_v0  ;;  %s1582_s25 = sshll.u32 %s2364_s3, 4  ;;  %s1583_s25 = int_to_ptr.vmem [resolvable:$true] %s1582_s25 }
 0x638   :  { %1321 = vmatpush1.msra.mxu0 %v3019_v57  ;;  %2026 = vmatpush3.msra.mxu1 %v3022_v62  ;;  %v1140_v62 = vld [vmem:[#allocation2 + $0xa0] sm:$0xff]  ;;  %s2304_s26 = scalar_lea.vmem %s1583_s25, 128  ;;  %p2309_p7 = scmp.lt.s32.totalorder %s1583_s25, %s1583_s25 }
 0x639   :  { %1322 = vmatprep.subr.mxu0 %v3025_v56  ;;  %2027 = vmatprep.subr.mxu1 %v3260_v0  ;;  %p2305_p6 = scmp.ne.s32.totalorder %s1583_s25, %s2304_s26  ;;  %p2310_p8 = scmp.lt.s32.totalorder %s2304_s26, %s2304_s26 }
 0x63a   :  { %1323 = vmatpush1.msra.mxu0 %v3029_v58  ;;  %2028 = vmatpush3.msra.mxu1 %v3032_v59 }
 0x63b   :  { %1324 = vmatprep.subr.mxu0 %v3035_v60  ;;  %2029 = vmatprep.subr.mxu1 %v3260_v0  ;;  %p2311_p9 = por %p2310_p8, %p2309_p7 }
 0x63c   :  { %1325 = vmatpush1.msra.mxu0 %v3039_v48  ;;  %2030 = vmatpush3.msra.mxu1 %v3042_v49 }
 0x63d   :  { %1326 = vmatprep.subr.mxu0 %v3045_v55  ;;  %2031 = vmatprep.subr.mxu1 %v3260_v0  ;;  %p2312_p10 = pnand %p2311_p9, %p2305_p6 }
 0x63e   :  { %1327 = vmatpush1.msra.mxu0 %v3049_v50  ;;  %2032 = vmatpush3.msra.mxu1 %v3052_v51  ;;  %v1487_v51 = vld [vmem:[#allocation8 + $0x78] sm:$0xff] }
 0x63f   :  { %1328 = vmatprep.subr.mxu0 %v3055_v52  ;;  %2033 = vmatprep.subr.mxu1 %v3260_v0  ;;  %v1486_v52 = vld [vmem:[#allocation8 + $0x70] sm:$0xff] }
 0x640   :  { %1329 = vmatpush1.msra.mxu0 %v3059_v53  ;;  %2034 = vmatpush3.msra.mxu1 %v3062_v61  ;;  %v1485_v53 = vld [vmem:[#allocation8 + $0x68] sm:$0xff]  ;;  %v1484_v61 = vld [vmem:[#allocation8 + $0x60] sm:$0xff] }
 0x641   :  { %1330 = vmatprep.subr.mxu0 %v3065_v2  ;;  %2035 = vmatprep.subr.mxu1 %v3260_v0  ;;  %v1483_v2 = vld [vmem:[#allocation8 + $0x58] sm:$0xff] }
 0x642   :  { %1331 = vmatpush1.msra.mxu0 %v3069_v3  ;;  %2036 = vmatpush3.msra.mxu1 %v3072_v4  ;;  %v1482_v3 = vld [vmem:[#allocation8 + $0x50] sm:$0xff]  ;;  %v1481_v4 = vld [vmem:[#allocation8 + $0x48] sm:$0xff] }
 0x643   :  { %1332 = vmatprep.subr.mxu0 %v3075_v5  ;;  %2037 = vmatprep.subr.mxu1 %v3260_v0  ;;  %v1480_v5 = vld [vmem:[#allocation8 + $0x40] sm:$0xff] }
 0x644   :  { %1333 = vmatpush1.msra.mxu0 %v3079_v7  ;;  %2038 = vmatpush3.msra.mxu1 %v3082_v8  ;;  %v1479_v7 = vld [vmem:[#allocation8 + $0x38] sm:$0xff]  ;;  %v1478_v8 = vld [vmem:[#allocation8 + $0x30] sm:$0xff] }
 0x645   :  { %1334 = vmatprep.subr.mxu0 %v3085_v9  ;;  %2039 = vmatprep.subr.mxu1 %v3260_v0  ;;  %v1477_v9 = vld [vmem:[#allocation8 + $0x28] sm:$0xff] }
 0x646   :  { %1335 = vmatpush1.msra.mxu0 %v3089_v10  ;;  %2040 = vmatpush3.msra.mxu1 %v3092_v11  ;;  %v1476_v10 = vld [vmem:[#allocation8 + $0x20] sm:$0xff]  ;;  %v1475_v11 = vld [vmem:[#allocation8 + $0x18] sm:$0xff] }
 0x647   :  { %1336 = vmatprep.subr.mxu0 %v3095_v12  ;;  %2041 = vmatprep.subr.mxu1 %v3260_v0  ;;  %v1474_v12 = vld [vmem:[#allocation8 + $0x10] sm:$0xff] }
 0x648   :  { %1337 = vmatpush1.msra.mxu0 %v3099_v13  ;;  %2042 = vmatpush3.msra.mxu1 %v3279_v63  ;;  %v1473_v13 = vld [vmem:[#allocation8 + $0x8] sm:$0xff] }
 0x649   :  { %1338 = vmatprep.subr.mxu0 %v3280_v31  ;;  %2043 = vmatprep.subr.mxu1 %v3260_v0 }
 0x64a   :  { %1339 = vmatpush1.msra.mxu0 %v3281_v32  ;;  %1372 = vmatprep.mubr.f32.mxu0 %v3260_v0 }
 0x64b   :  { %2044 = vmatpush3.msra.mxu1 %v3282_v33  ;;  %2045 = vmatprep.mubr.msk.f32.mxu1 %vm2363_vm0, %v3260_v0 }
 0x64c   :  { %2048 = vmatprep.subr.mxu0 %v3260_v0 }
 0x6eb   :  { %v1207_v35 = vpop.f32.mrf.mxu0  ;;  %v1278_v36 = vpop.f32.mrf.mxu1 }
 0x6ec   :  { %v1282_v37 = vadd.f32 %v1207_v35, %v1138_v34  ;;  %v1296_v43 = vadd.f32 %v3195_v41, %v1278_v36 }
 0x6ed   :  { %v2012_v38 = vpop.f32.mrf.mxu1  ;;  %v1209_v42 = vpop.f32.mrf.mxu0 }
 0x6ee   :  { %v1610_v39 = vmul.f32 -1.442695, %v1282_v37  ;;  %v1289_v45 = vadd.f32 %v1209_v42, %v1139_v40 }
 0x6f0   :  { %2155 = vpow2.f32 %v1610_v39  ;;  %v1611_v46 = vmul.f32 -1.442695, %v1289_v45 }
 0x6f2   :  { %2157 = vpow2.f32 %v1611_v46 }
 0x6fd   :  { %v2156_v47 = vpop.eup %2155 }
 0x6fe   :  { %v1286_v44 = vadd.f32 1.0, %v2156_v47 }
 0x6ff   :  { %v2158_v54 = vpop.eup %2157 }
 0x700   :  { %2159 = vrcp.f32 %v1286_v44  ;;  %v1293_v1 = vadd.f32 1.0, %v2158_v54 }
 0x702   :  { %2161 = vrcp.f32 %v1293_v1 }
 0x70d   :  { %v2160_v57 = vpop.eup %2159 }
 0x70e   :  { %v1297_v56 = vmul.f32 %v2160_v57, %v1296_v43 }
 0x70f   :  { %v2162_v59 = vpop.eup %2161 }
 0x710   :  { %v1298_v58 = vadd.f32 %v1297_v56, %v1140_v62  ;;  %v1300_v60 = vsub.f32 1.0, %v2162_v59  ;;  %v1302_v55 = vmul.f32 %v2162_v59, %v3122_v25 }
 0x712   :  { %2163 = vtanh.f32 %v1298_v58 }
 0x71f   :  { %v2164_v48 = vpop.eup %2163 }
 0x720   :  { %v1301_v49 = vmul.f32 %v2164_v48, %v1300_v60 }
 0x722   :  { %v3199_v50 = vadd.f32 %v1302_v55, %v1301_v49 }
 0x724   :  { %1373 = vmatmul.mubr.f32.vlgmr.msra.gmra.mxu0 %v3199_v50  ;;  %2046 = vmatmul.mubr.f32.vlgmr.msra.gmra.mxu1 %v3199_v50 }
 0x725   :  { %2080 = vmatprep.mubr.msk.f32.mxu0 %vm2363_vm0, %v3260_v0  ;;  %2049 = vmatpush3.msra.mxu0 %v1487_v51 }
 0x726   :  { %2050 = vmatprep.subr.mxu0 %v3260_v0 }
 0x727   :  { %2051 = vmatpush3.msra.mxu0 %v1486_v52 }
 0x728   :  { %2052 = vmatprep.subr.mxu0 %v3260_v0 }
 0x729   :  { %2053 = vmatpush3.msra.mxu0 %v1485_v53 }
 0x72a   :  { %2054 = vmatprep.subr.mxu0 %v3260_v0 }
 0x72b   :  { %2055 = vmatpush3.msra.mxu0 %v1484_v61 }
 0x72c   :  { %2056 = vmatprep.subr.mxu0 %v3260_v0 }
 0x72d   :  { %2057 = vmatpush3.msra.mxu0 %v1483_v2 }
 0x72e   :  { %2058 = vmatprep.subr.mxu0 %v3260_v0 }
 0x72f   :  { %2059 = vmatpush3.msra.mxu0 %v1482_v3 }
 0x730   :  { %2060 = vmatprep.subr.mxu0 %v3260_v0 }
 0x731   :  { %2061 = vmatpush3.msra.mxu0 %v1481_v4 }
 0x732   :  { %2062 = vmatprep.subr.mxu0 %v3260_v0 }
 0x733   :  { %2063 = vmatpush3.msra.mxu0 %v1480_v5 }
 0x734   :  { %2064 = vmatprep.subr.mxu0 %v3260_v0 }
 0x735   :  { %2065 = vmatpush3.msra.mxu0 %v1479_v7 }
 0x736   :  { %2066 = vmatprep.subr.mxu0 %v3260_v0 }
 0x737   :  { %2067 = vmatpush3.msra.mxu0 %v1478_v8 }
 0x738   :  { %2068 = vmatprep.subr.mxu0 %v3260_v0 }
 0x739   :  { %2069 = vmatpush3.msra.mxu0 %v1477_v9 }
 0x73a   :  { %2070 = vmatprep.subr.mxu0 %v3260_v0 }
 0x73b   :  { %2071 = vmatpush3.msra.mxu0 %v1476_v10 }
 0x73c   :  { %2072 = vmatprep.subr.mxu0 %v3260_v0 }
 0x73d   :  { %2073 = vmatpush3.msra.mxu0 %v1475_v11 }
 0x73e   :  { %2074 = vmatprep.subr.mxu0 %v3260_v0 }
 0x73f   :  { %2075 = vmatpush3.msra.mxu0 %v1474_v12 }
 0x740   :  { %2076 = vmatprep.subr.mxu0 %v3260_v0 }
 0x741   :  { %2077 = vmatpush3.msra.mxu0 %v1473_v13 }
 0x742   :  { %2078 = vmatprep.subr.mxu0 %v3260_v0 }
 0x743   :  { %2079 = vmatpush3.msra.mxu0 %v1472_v14 }
 0x7e4   :  { %v1374_v16 = vpop.f32.mrf.mxu0  ;;  %v1445_v17 = vpop.f32.mrf.mxu1 }
 0x7e5   :  { %v1449_v20 = vadd.f32 %v1374_v16, %v1305_v15  ;;  %v1463_v0 = vadd.f32 %v3195_v41, %v1445_v17 }
 0x7e6   :  { %v2047_v26 = vpop.f32.mrf.mxu1  ;;  %v1376_v29 = vpop.f32.mrf.mxu0 }
 0x7e7   :  { %v1612_v27 = vmul.f32 -1.442695, %v1449_v20  ;;  %v1456_v30 = vadd.f32 %v1376_v29, %v1306_v28 }
 0x7e9   :  { %2165 = vpow2.f32 %v1612_v27  ;;  %v1613_v6 = vmul.f32 -1.442695, %v1456_v30 }
 0x7eb   :  { %2167 = vpow2.f32 %v1613_v6 }
 0x7f6   :  { %v2166_v18 = vpop.eup %2165 }
 0x7f7   :  { %v1453_v19 = vadd.f32 1.0, %v2166_v18 }
 0x7f8   :  { %v2168_v21 = vpop.eup %2167 }
 0x7f9   :  { %2169 = vrcp.f32 %v1453_v19  ;;  %v1460_v22 = vadd.f32 1.0, %v2168_v21 }
 0x7fb   :  { %2171 = vrcp.f32 %v1460_v22 }
 0x806   :  { %v2170_v23 = vpop.eup %2169 }
 0x807   :  { %v1464_v25 = vmul.f32 %v2170_v23, %v1463_v0 }
 0x808   :  { %v2172_v31 = vpop.eup %2171 }
 0x809   :  { %v1465_v63 = vadd.f32 %v1464_v25, %v1307_v24  ;;  %v1467_v32 = vsub.f32 1.0, %v2172_v31  ;;  %v1469_v35 = vmul.f32 %v2172_v31, %v3199_v50 }
 0x80b   :  { %2173 = vtanh.f32 %v1465_v63 }
 0x818   :  { %v2174_v33 = vpop.eup %2173 }
 0x819   :  { %v1468_v34 = vmul.f32 %v2174_v33, %v1467_v32 }
 0x81b   :  { %v1470_v36 = vadd.f32 %v1469_v35, %v1468_v34 }
 0x81d   :  { %2081 = vmatmul.mubr.f32.vlgmr.msra.gmra.mxu0 %v1470_v36  ;;  %1471 = vst [vmem:[#allocation11] sm:$0xff] %v1470_v36 }
 0x81e   :  { %2315 = shalt.err (!%p2312_p10)
}
 0x81f   :  { %1585 = dma.vmem_to_hbm [thread:$0]  %s1583_s25, 128, %s3238_s7, [#allocation12]   ;;  %v1614_v37 = vld [vmem:[%s3236_s5] ss:$0 sm:$0xff] }
 0x820   :  { %s2365_s8 = smov [#allocation10]  }
 0x821   :  { %s1572_s9 = sshll.u32 %s2365_s8, 4  ;;  %s1573_s9 = int_to_ptr.vmem [resolvable:$true] %s1572_s9 }
 0x822   :  { %s2324_s10 = scalar_lea.vmem %s1573_s9, 128  ;;  %p2329_p12 = scmp.lt.s32.totalorder %s1573_s9, %s1573_s9 }
 0x823   :  { %p2325_p11 = scmp.ne.s32.totalorder %s1573_s9, %s2324_s10  ;;  %p2330_p13 = scmp.lt.s32.totalorder %s2324_s10, %s2324_s10 }
 0x825   :  { %p2331_p0 = por %p2330_p13, %p2329_p12 }
 0x827   :  { %p2332_p1 = pnand %p2331_p0, %p2325_p11 }
 0x8dd   :  { %v1561_v38 = vpop.f32.mrf.mxu0 }
 0x8de   :  { %v1562_v39 = vadd.f32 %v1614_v37, %v1561_v38 }
 0x8df   :  { %v2082_v40 = vpop.f32.mrf.mxu0 }
 0x8e0   :  { %1565 = vst [vmem:[#allocation10] sm:$0xff] %v1562_v39 }
 0x8e1   :  { %2335 = shalt.err (!%p2332_p1)
}
 0x8e2   :  { %1575 = dma.vmem_to_hbm [thread:$0]  %s1573_s9, 128, %s3237_s6, [#allocation4]  }
 0x8e3   :  { %2350 = dma.done.wait [#allocation4], 128  }
 0x8e4   :  { %2351 = vsyncadd [#allocation4], 4294967168 }
 0x8e5   :  { %2352 = dma.done.wait [#allocation12], 128  }
 0x8e6   :  { %2353 = vsyncadd [#allocation12], 4294967168 }
 0x8e7   :  { %1592 = vsyncpa [#allocation3], 1 }
 0x8e8   :  { %1593 = vsyncpa [#allocation6], 1 }
 0x8e9   :  { %1594 = vsyncpa [#allocation9], 1 }
 0x8ea   :  { %1595 = vsyncpa [#allocation4], 1 }
 0x8eb   :  { %1596 = vsyncpa [#allocation12], 1 }

</bundles_post_ra>
